<compile_context>
chip_gen: v6e
topology: v6e:2x2x1
jax: 0.10.0
libtpu: 0.0.40
codegen_flags: <defaults>
</compile_context>

<pallas_src>
import jax
import jax.numpy as jnp
from jax.experimental import pallas as pl
from jax.experimental.pallas import tpu as pltpu


def _gausin(x):
    return -jnp.sin(x) * jnp.exp(-x * x * 0.5)


def mlp_kernel(x_ref, w1_ref, b1_ref, w2_ref, b2_ref, w3c_ref, b3_ref, o_ref):
    # Transposed, lane-dense layout: activations are (features, bm) with the
    # batch on the 128-wide lane axis.
    x = x_ref[...]        # (in_dim, bm)
    w1 = w1_ref[...]      # (hid, in_dim)   -- PyTorch (out, in) layout
    w2 = w2_ref[...]      # (hid, hid)
    w3c = w3c_ref[...]    # (hid, 1)        -- fc3 weight as a column

    def affine_t(w, h, b):
        # (out, in) x (in, bm) + (out, 1) -> (out, bm), exact f32 on the VPU.
        # Rank-1 broadcast MACs avoid MXU K/N padding for these tiny dims.
        acc = w[:, 0:1] * h[0:1, :]
        for k in range(1, w.shape[1]):
            acc = acc + w[:, k:k + 1] * h[k:k + 1, :]
        return acc + b

    h1 = _gausin(affine_t(w1, x, b1_ref[...]))    # (hid, bm)
    h2 = _gausin(affine_t(w2, h1, b2_ref[...]))   # (hid, bm)

    # fc3: single output feature -> elementwise mul + sublane reduce keeps the
    # (1, bm) result lane-dense (unmasked vst), no MXU round-trip.
    o_ref[...] = jnp.sum(h2 * w3c, axis=0, keepdims=True) + b3_ref[...]


def _pick_bm(n):
    """Lane tile: multiple of 128 (or full batch); target 512-1024 rows per
    grid step but keep >= 2 steps when possible (v7x has 2 TensorCores)."""
    if n < 256 or n % 128 != 0:
        return n
    bm = min(1024, max(128, (n // 2) // 128 * 128))
    while n % bm != 0:
        bm -= 128
    return bm


def nn_forward(x, params, *, bm=None):
    """x: (N, input_size) float32 -> (N, 1) float32."""
    w1, b1, w2, b2, w3c, b3 = params
    n, in_dim = x.shape
    hid = w1.shape[0]
    if bm is None:
        bm = _pick_bm(n)
    assert n % bm == 0, (n, bm)

    x_t = x.T  # (in_dim, N): batch on the lane axis (layout plumbing, free-ish)

    resident = lambda shape: pl.BlockSpec(shape, lambda i: (0, 0))

    out_t = pl.pallas_call(
        mlp_kernel,
        out_shape=jax.ShapeDtypeStruct((1, n), jnp.float32),
        grid_spec=pl.GridSpec(
            grid=(n // bm,),
            in_specs=[
                pl.BlockSpec((in_dim, bm), lambda i: (0, i)),  # x tile (lane-dense)
                resident((hid, in_dim)),                       # w1
                resident((hid, 1)),                            # b1
                resident((hid, hid)),                          # w2
                resident((hid, 1)),                            # b2
                resident((hid, 1)),                            # w3 (column)
                resident((1, 1)),                              # b3
            ],
            out_specs=pl.BlockSpec((1, bm), lambda i: (0, i)),  # lane-dense out
        ),
        compiler_params=pltpu.CompilerParams(
            dimension_semantics=("parallel",)),
    )(x_t, w1, b1, w2, b2, w3c, b3)

    return out_t.reshape(n, 1)


def init_params(key, input_size=1, hidden_size=16):
    """Mirrors nn.Linear's U(-1/sqrt(fan_in), 1/sqrt(fan_in)) init.
    Weights stored in PyTorch (out_features, in_features) layout; biases as
    (out_features, 1) columns; fc3 weight stored as a (hidden, 1) column."""
    ks = jax.random.split(key, 6)

    def lin(kw, kb, fan_in, fan_out):
        bound = 1.0 / (fan_in ** 0.5)
        w = jax.random.uniform(kw, (fan_out, fan_in), jnp.float32, -bound, bound)
        b = jax.random.uniform(kb, (fan_out, 1), jnp.float32, -bound, bound)
        return w, b

    w1, b1 = lin(ks[0], ks[1], input_size, hidden_size)    # (hid, in), (hid, 1)
    w2, b2 = lin(ks[2], ks[3], hidden_size, hidden_size)   # (hid, hid), (hid, 1)
    w3, b3 = lin(ks[4], ks[5], hidden_size, 1)             # (1, hid), (1, 1)
    return (w1, b1, w2, b2, w3.T, b3)                      # w3 as (hid, 1) column


def nn_forward_ref(x, params):
    """Pure-JAX reference (exact f32 via HIGHEST-precision dots)."""
    w1, b1, w2, b2, w3c, b3 = params
    hi = jax.lax.Precision.HIGHEST
    h1 = _gausin(jnp.dot(x, w1.T, precision=hi) + b1[:, 0])
    h2 = _gausin(jnp.dot(h1, w2.T, precision=hi) + b2[:, 0])
    return jnp.dot(h2, w3c, precision=hi) + b3[0, 0]


if __name__ == "__main__":
    key = jax.random.PRNGKey(0)
    k_x, k_p = jax.random.split(key)

    N, IN, HID = 512, 1, 16
    x = jax.random.normal(k_x, (N, IN), jnp.float32)
    params = init_params(k_p, input_size=IN, hidden_size=HID)

    out = nn_forward(x, params)          # bm auto-picked (256 here -> 2 steps)
    out = jax.block_until_ready(out)

    ref = nn_forward_ref(x, params)
    assert out.shape == (N, 1), out.shape
    assert jnp.allclose(out, ref, atol=1e-5, rtol=1e-5), float(
        jnp.max(jnp.abs(out - ref)))

    print("KERNEL_OK")
</pallas_src>

<mosaic_0001>
module attributes {stable_mosaic.version = 11 : i64} {
  func.func @mlp_kernel(%arg0: i32, %arg1: memref<1x256xf32, #tpu.memory_space<vmem>>, %arg2: memref<16x1xf32, #tpu.memory_space<vmem>>, %arg3: memref<16x1xf32, #tpu.memory_space<vmem>>, %arg4: memref<16x16xf32, #tpu.memory_space<vmem>>, %arg5: memref<16x1xf32, #tpu.memory_space<vmem>>, %arg6: memref<16x1xf32, #tpu.memory_space<vmem>>, %arg7: memref<1x1xf32, #tpu.memory_space<vmem>>, %arg8: memref<1x256xf32, #tpu.memory_space<vmem>>) attributes {dimension_semantics = [#tpu.dimension_semantics<parallel>], iteration_bounds = array<i64: 2>, scalar_prefetch = 0 : i64, scratch_operands = 0 : i64, tpu.core_type = #tpu.core_type<tc>, window_params = [{transform_indices = @transform_0, window_bounds = array<i64: 1, 256>}, {pipeline_mode = #tpu.pipeline_mode<synchronous>, transform_indices = @transform_1, window_bounds = array<i64: 16, 1>}, {pipeline_mode = #tpu.pipeline_mode<synchronous>, transform_indices = @transform_2, window_bounds = array<i64: 16, 1>}, {pipeline_mode = #tpu.pipeline_mode<synchronous>, transform_indices = @transform_3, window_bounds = array<i64: 16, 16>}, {pipeline_mode = #tpu.pipeline_mode<synchronous>, transform_indices = @transform_4, window_bounds = array<i64: 16, 1>}, {pipeline_mode = #tpu.pipeline_mode<synchronous>, transform_indices = @transform_5, window_bounds = array<i64: 16, 1>}, {pipeline_mode = #tpu.pipeline_mode<synchronous>, transform_indices = @transform_6, window_bounds = array<i64: 1, 1>}, {transform_indices = @transform_7, window_bounds = array<i64: 1, 256>}]} {
    %c0 = arith.constant 0 : index
    %c0_0 = arith.constant 0 : index
    %0 = vector.load %arg1[%c0, %c0_0] : memref<1x256xf32, #tpu.memory_space<vmem>>, vector<1x256xf32>
    %c0_1 = arith.constant 0 : index
    %c0_2 = arith.constant 0 : index
    %1 = vector.load %arg2[%c0_1, %c0_2] : memref<16x1xf32, #tpu.memory_space<vmem>>, vector<16x1xf32>
    %c0_3 = arith.constant 0 : index
    %c0_4 = arith.constant 0 : index
    %2 = vector.load %arg4[%c0_3, %c0_4] : memref<16x16xf32, #tpu.memory_space<vmem>>, vector<16x16xf32>
    %c0_5 = arith.constant 0 : index
    %c0_6 = arith.constant 0 : index
    %3 = vector.load %arg6[%c0_5, %c0_6] : memref<16x1xf32, #tpu.memory_space<vmem>>, vector<16x1xf32>
    %c0_7 = arith.constant 0 : index
    %c0_8 = arith.constant 0 : index
    %4 = vector.load %arg3[%c0_7, %c0_8] : memref<16x1xf32, #tpu.memory_space<vmem>>, vector<16x1xf32>
    %5 = vector.broadcast %1 : vector<16x1xf32> to vector<16x256xf32>
    %6 = vector.broadcast %0 : vector<1x256xf32> to vector<16x256xf32>
    %7 = arith.mulf %5, %6 : vector<16x256xf32>
    %8 = vector.broadcast %4 : vector<16x1xf32> to vector<16x256xf32>
    %9 = arith.addf %7, %8 : vector<16x256xf32>
    %10 = math.sin %9 : vector<16x256xf32>
    %cst = arith.constant 0.000000e+00 : f32
    %11 = vector.broadcast %cst : f32 to vector<16x256xf32>
    %12 = arith.subf %11, %10 : vector<16x256xf32>
    %cst_9 = arith.constant 0.000000e+00 : f32
    %13 = vector.broadcast %cst_9 : f32 to vector<16x256xf32>
    %14 = arith.subf %13, %9 : vector<16x256xf32>
    %15 = arith.mulf %14, %9 : vector<16x256xf32>
    %cst_10 = arith.constant 5.000000e-01 : f32
    %16 = vector.broadcast %cst_10 : f32 to vector<16x256xf32>
    %17 = arith.mulf %15, %16 : vector<16x256xf32>
    %18 = math.exp %17 : vector<16x256xf32>
    %19 = arith.mulf %12, %18 : vector<16x256xf32>
    %c0_11 = arith.constant 0 : index
    %c0_12 = arith.constant 0 : index
    %20 = vector.load %arg5[%c0_11, %c0_12] : memref<16x1xf32, #tpu.memory_space<vmem>>, vector<16x1xf32>
    %21 = vector.extract_strided_slice %2 {offsets = [0, 0], sizes = [16, 1], strides = [1, 1]} : vector<16x16xf32> to vector<16x1xf32>
    %22 = vector.extract_strided_slice %19 {offsets = [0, 0], sizes = [1, 256], strides = [1, 1]} : vector<16x256xf32> to vector<1x256xf32>
    %23 = vector.broadcast %21 : vector<16x1xf32> to vector<16x256xf32>
    %24 = vector.broadcast %22 : vector<1x256xf32> to vector<16x256xf32>
    %25 = arith.mulf %23, %24 : vector<16x256xf32>
    %26 = vector.extract_strided_slice %2 {offsets = [0, 1], sizes = [16, 1], strides = [1, 1]} : vector<16x16xf32> to vector<16x1xf32>
    %27 = vector.extract_strided_slice %19 {offsets = [1, 0], sizes = [1, 256], strides = [1, 1]} : vector<16x256xf32> to vector<1x256xf32>
    %28 = vector.broadcast %26 : vector<16x1xf32> to vector<16x256xf32>
    %29 = vector.broadcast %27 : vector<1x256xf32> to vector<16x256xf32>
    %30 = arith.mulf %28, %29 : vector<16x256xf32>
    %31 = arith.addf %25, %30 : vector<16x256xf32>
    %32 = vector.extract_strided_slice %2 {offsets = [0, 2], sizes = [16, 1], strides = [1, 1]} : vector<16x16xf32> to vector<16x1xf32>
    %33 = vector.extract_strided_slice %19 {offsets = [2, 0], sizes = [1, 256], strides = [1, 1]} : vector<16x256xf32> to vector<1x256xf32>
    %34 = vector.broadcast %32 : vector<16x1xf32> to vector<16x256xf32>
    %35 = vector.broadcast %33 : vector<1x256xf32> to vector<16x256xf32>
    %36 = arith.mulf %34, %35 : vector<16x256xf32>
    %37 = arith.addf %31, %36 : vector<16x256xf32>
    %38 = vector.extract_strided_slice %2 {offsets = [0, 3], sizes = [16, 1], strides = [1, 1]} : vector<16x16xf32> to vector<16x1xf32>
    %39 = vector.extract_strided_slice %19 {offsets = [3, 0], sizes = [1, 256], strides = [1, 1]} : vector<16x256xf32> to vector<1x256xf32>
    %40 = vector.broadcast %38 : vector<16x1xf32> to vector<16x256xf32>
    %41 = vector.broadcast %39 : vector<1x256xf32> to vector<16x256xf32>
    %42 = arith.mulf %40, %41 : vector<16x256xf32>
    %43 = arith.addf %37, %42 : vector<16x256xf32>
    %44 = vector.extract_strided_slice %2 {offsets = [0, 4], sizes = [16, 1], strides = [1, 1]} : vector<16x16xf32> to vector<16x1xf32>
    %45 = vector.extract_strided_slice %19 {offsets = [4, 0], sizes = [1, 256], strides = [1, 1]} : vector<16x256xf32> to vector<1x256xf32>
    %46 = vector.broadcast %44 : vector<16x1xf32> to vector<16x256xf32>
    %47 = vector.broadcast %45 : vector<1x256xf32> to vector<16x256xf32>
    %48 = arith.mulf %46, %47 : vector<16x256xf32>
    %49 = arith.addf %43, %48 : vector<16x256xf32>
    %50 = vector.extract_strided_slice %2 {offsets = [0, 5], sizes = [16, 1], strides = [1, 1]} : vector<16x16xf32> to vector<16x1xf32>
    %51 = vector.extract_strided_slice %19 {offsets = [5, 0], sizes = [1, 256], strides = [1, 1]} : vector<16x256xf32> to vector<1x256xf32>
    %52 = vector.broadcast %50 : vector<16x1xf32> to vector<16x256xf32>
    %53 = vector.broadcast %51 : vector<1x256xf32> to vector<16x256xf32>
    %54 = arith.mulf %52, %53 : vector<16x256xf32>
    %55 = arith.addf %49, %54 : vector<16x256xf32>
    %56 = vector.extract_strided_slice %2 {offsets = [0, 6], sizes = [16, 1], strides = [1, 1]} : vector<16x16xf32> to vector<16x1xf32>
    %57 = vector.extract_strided_slice %19 {offsets = [6, 0], sizes = [1, 256], strides = [1, 1]} : vector<16x256xf32> to vector<1x256xf32>
    %58 = vector.broadcast %56 : vector<16x1xf32> to vector<16x256xf32>
    %59 = vector.broadcast %57 : vector<1x256xf32> to vector<16x256xf32>
    %60 = arith.mulf %58, %59 : vector<16x256xf32>
    %61 = arith.addf %55, %60 : vector<16x256xf32>
    %62 = vector.extract_strided_slice %2 {offsets = [0, 7], sizes = [16, 1], strides = [1, 1]} : vector<16x16xf32> to vector<16x1xf32>
    %63 = vector.extract_strided_slice %19 {offsets = [7, 0], sizes = [1, 256], strides = [1, 1]} : vector<16x256xf32> to vector<1x256xf32>
    %64 = vector.broadcast %62 : vector<16x1xf32> to vector<16x256xf32>
    %65 = vector.broadcast %63 : vector<1x256xf32> to vector<16x256xf32>
    %66 = arith.mulf %64, %65 : vector<16x256xf32>
    %67 = arith.addf %61, %66 : vector<16x256xf32>
    %68 = vector.extract_strided_slice %2 {offsets = [0, 8], sizes = [16, 1], strides = [1, 1]} : vector<16x16xf32> to vector<16x1xf32>
    %69 = vector.extract_strided_slice %19 {offsets = [8, 0], sizes = [1, 256], strides = [1, 1]} : vector<16x256xf32> to vector<1x256xf32>
    %70 = vector.broadcast %68 : vector<16x1xf32> to vector<16x256xf32>
    %71 = vector.broadcast %69 : vector<1x256xf32> to vector<16x256xf32>
    %72 = arith.mulf %70, %71 : vector<16x256xf32>
    %73 = arith.addf %67, %72 : vector<16x256xf32>
    %74 = vector.extract_strided_slice %2 {offsets = [0, 9], sizes = [16, 1], strides = [1, 1]} : vector<16x16xf32> to vector<16x1xf32>
    %75 = vector.extract_strided_slice %19 {offsets = [9, 0], sizes = [1, 256], strides = [1, 1]} : vector<16x256xf32> to vector<1x256xf32>
    %76 = vector.broadcast %74 : vector<16x1xf32> to vector<16x256xf32>
    %77 = vector.broadcast %75 : vector<1x256xf32> to vector<16x256xf32>
    %78 = arith.mulf %76, %77 : vector<16x256xf32>
    %79 = arith.addf %73, %78 : vector<16x256xf32>
    %80 = vector.extract_strided_slice %2 {offsets = [0, 10], sizes = [16, 1], strides = [1, 1]} : vector<16x16xf32> to vector<16x1xf32>
    %81 = vector.extract_strided_slice %19 {offsets = [10, 0], sizes = [1, 256], strides = [1, 1]} : vector<16x256xf32> to vector<1x256xf32>
    %82 = vector.broadcast %80 : vector<16x1xf32> to vector<16x256xf32>
    %83 = vector.broadcast %81 : vector<1x256xf32> to vector<16x256xf32>
    %84 = arith.mulf %82, %83 : vector<16x256xf32>
    %85 = arith.addf %79, %84 : vector<16x256xf32>
    %86 = vector.extract_strided_slice %2 {offsets = [0, 11], sizes = [16, 1], strides = [1, 1]} : vector<16x16xf32> to vector<16x1xf32>
    %87 = vector.extract_strided_slice %19 {offsets = [11, 0], sizes = [1, 256], strides = [1, 1]} : vector<16x256xf32> to vector<1x256xf32>
    %88 = vector.broadcast %86 : vector<16x1xf32> to vector<16x256xf32>
    %89 = vector.broadcast %87 : vector<1x256xf32> to vector<16x256xf32>
    %90 = arith.mulf %88, %89 : vector<16x256xf32>
    %91 = arith.addf %85, %90 : vector<16x256xf32>
    %92 = vector.extract_strided_slice %2 {offsets = [0, 12], sizes = [16, 1], strides = [1, 1]} : vector<16x16xf32> to vector<16x1xf32>
    %93 = vector.extract_strided_slice %19 {offsets = [12, 0], sizes = [1, 256], strides = [1, 1]} : vector<16x256xf32> to vector<1x256xf32>
    %94 = vector.broadcast %92 : vector<16x1xf32> to vector<16x256xf32>
    %95 = vector.broadcast %93 : vector<1x256xf32> to vector<16x256xf32>
    %96 = arith.mulf %94, %95 : vector<16x256xf32>
    %97 = arith.addf %91, %96 : vector<16x256xf32>
    %98 = vector.extract_strided_slice %2 {offsets = [0, 13], sizes = [16, 1], strides = [1, 1]} : vector<16x16xf32> to vector<16x1xf32>
    %99 = vector.extract_strided_slice %19 {offsets = [13, 0], sizes = [1, 256], strides = [1, 1]} : vector<16x256xf32> to vector<1x256xf32>
    %100 = vector.broadcast %98 : vector<16x1xf32> to vector<16x256xf32>
    %101 = vector.broadcast %99 : vector<1x256xf32> to vector<16x256xf32>
    %102 = arith.mulf %100, %101 : vector<16x256xf32>
    %103 = arith.addf %97, %102 : vector<16x256xf32>
    %104 = vector.extract_strided_slice %2 {offsets = [0, 14], sizes = [16, 1], strides = [1, 1]} : vector<16x16xf32> to vector<16x1xf32>
    %105 = vector.extract_strided_slice %19 {offsets = [14, 0], sizes = [1, 256], strides = [1, 1]} : vector<16x256xf32> to vector<1x256xf32>
    %106 = vector.broadcast %104 : vector<16x1xf32> to vector<16x256xf32>
    %107 = vector.broadcast %105 : vector<1x256xf32> to vector<16x256xf32>
    %108 = arith.mulf %106, %107 : vector<16x256xf32>
    %109 = arith.addf %103, %108 : vector<16x256xf32>
    %110 = vector.extract_strided_slice %2 {offsets = [0, 15], sizes = [16, 1], strides = [1, 1]} : vector<16x16xf32> to vector<16x1xf32>
    %111 = vector.extract_strided_slice %19 {offsets = [15, 0], sizes = [1, 256], strides = [1, 1]} : vector<16x256xf32> to vector<1x256xf32>
    %112 = vector.broadcast %110 : vector<16x1xf32> to vector<16x256xf32>
    %113 = vector.broadcast %111 : vector<1x256xf32> to vector<16x256xf32>
    %114 = arith.mulf %112, %113 : vector<16x256xf32>
    %115 = arith.addf %109, %114 : vector<16x256xf32>
    %116 = vector.broadcast %20 : vector<16x1xf32> to vector<16x256xf32>
    %117 = arith.addf %115, %116 : vector<16x256xf32>
    %118 = math.sin %117 : vector<16x256xf32>
    %cst_13 = arith.constant 0.000000e+00 : f32
    %119 = vector.broadcast %cst_13 : f32 to vector<16x256xf32>
    %120 = arith.subf %119, %118 : vector<16x256xf32>
    %cst_14 = arith.constant 0.000000e+00 : f32
    %121 = vector.broadcast %cst_14 : f32 to vector<16x256xf32>
    %122 = arith.subf %121, %117 : vector<16x256xf32>
    %123 = arith.mulf %122, %117 : vector<16x256xf32>
    %cst_15 = arith.constant 5.000000e-01 : f32
    %124 = vector.broadcast %cst_15 : f32 to vector<16x256xf32>
    %125 = arith.mulf %123, %124 : vector<16x256xf32>
    %126 = math.exp %125 : vector<16x256xf32>
    %127 = arith.mulf %120, %126 : vector<16x256xf32>
    %128 = vector.broadcast %3 : vector<16x1xf32> to vector<16x256xf32>
    %129 = arith.mulf %127, %128 : vector<16x256xf32>
    %cst_16 = arith.constant dense<0.000000e+00> : vector<256xf32>
    %130 = vector.multi_reduction <add>, %129, %cst_16 [0] : vector<16x256xf32> to vector<256xf32>
    %131 = vector.shape_cast %130 : vector<256xf32> to vector<1x256xf32>
    %c0_17 = arith.constant 0 : index
    %c0_18 = arith.constant 0 : index
    %132 = vector.load %arg7[%c0_17, %c0_18] : memref<1x1xf32, #tpu.memory_space<vmem>>, vector<1x1xf32>
    %133 = vector.broadcast %132 : vector<1x1xf32> to vector<1x256xf32>
    %134 = arith.addf %131, %133 : vector<1x256xf32>
    %c0_19 = arith.constant 0 : index
    %c0_20 = arith.constant 0 : index
    %135 = vector.load %arg8[%c0_19, %c0_20] : memref<1x256xf32, #tpu.memory_space<vmem>>, vector<1x256xf32>
    tpu.vector_store %arg8[%c0_19, %c0_20], %134 {strides = array<i32>} : memref<1x256xf32, #tpu.memory_space<vmem>>, vector<1x256xf32>,
    return
  }
  func.func @transform_0(%arg0: i32) -> (i32, i32) {
    %c0_i32 = arith.constant 0 : i32
    %c0_i32_0 = arith.constant 0 : i32
    return %c0_i32, %arg0 : i32, i32
  }
  func.func @transform_1(%arg0: i32) -> (i32, i32) {
    %c0_i32 = arith.constant 0 : i32
    %c0_i32_0 = arith.constant 0 : i32
    %c0_i32_1 = arith.constant 0 : i32
    return %c0_i32, %c0_i32_0 : i32, i32
  }
  func.func @transform_2(%arg0: i32) -> (i32, i32) {
    %c0_i32 = arith.constant 0 : i32
    %c0_i32_0 = arith.constant 0 : i32
    %c0_i32_1 = arith.constant 0 : i32
    return %c0_i32, %c0_i32_0 : i32, i32
  }
  func.func @transform_3(%arg0: i32) -> (i32, i32) {
    %c0_i32 = arith.constant 0 : i32
    %c0_i32_0 = arith.constant 0 : i32
    %c0_i32_1 = arith.constant 0 : i32
    return %c0_i32, %c0_i32_0 : i32, i32
  }
  func.func @transform_4(%arg0: i32) -> (i32, i32) {
    %c0_i32 = arith.constant 0 : i32
    %c0_i32_0 = arith.constant 0 : i32
    %c0_i32_1 = arith.constant 0 : i32
    return %c0_i32, %c0_i32_0 : i32, i32
  }
  func.func @transform_5(%arg0: i32) -> (i32, i32) {
    %c0_i32 = arith.constant 0 : i32
    %c0_i32_0 = arith.constant 0 : i32
    %c0_i32_1 = arith.constant 0 : i32
    return %c0_i32, %c0_i32_0 : i32, i32
  }
  func.func @transform_6(%arg0: i32) -> (i32, i32) {
    %c0_i32 = arith.constant 0 : i32
    %c0_i32_0 = arith.constant 0 : i32
    %c0_i32_1 = arith.constant 0 : i32
    return %c0_i32, %c0_i32_0 : i32, i32
  }
  func.func @transform_7(%arg0: i32) -> (i32, i32) {
    %c0_i32 = arith.constant 0 : i32
    %c0_i32_0 = arith.constant 0 : i32
    return %c0_i32, %arg0 : i32, i32
  }
}

</mosaic_0001>

<bundles_post_ra>
// kernel: tpu_custom_call.1
= control target key start
LH: loop header
LB: loop body
LE: loop exit
PB: predicated region body
PF: predicated region fallthrough
CT: control target
= control target key end

     0   :  { %s3087_s0 = inlined_call_operand.vmem [shape: f32[1,512], index: 0, kind: input, shape index: {}]   ;;  %s3088_s1 = inlined_call_operand.vmem [shape: f32[16,1], index: 1, kind: input, shape index: {}]   ;;  %s3089_s2 = inlined_call_operand.vmem [shape: f32[16,1], index: 2, kind: input, shape index: {}]   ;;  %s3090_s3 = inlined_call_operand.vmem [shape: f32[16,16], index: 3, kind: input, shape index: {}]   ;;  %s3091_s4 = inlined_call_operand.vmem [shape: f32[16,1], index: 4, kind: input, shape index: {}]   ;;  %s3092_s5 = inlined_call_operand.vmem [shape: f32[16,1], index: 5, kind: input, shape index: {}]   ;;  %s3093_s6 = inlined_call_operand.<no memory space> [shape: f32[1,1], index: 6, kind: input, shape index: {}]   ;;  %s3094_s7 = inlined_call_operand.hbm [shape: f32[1,512], index: 7, kind: output, shape index: {}]  }
   0x1   :  { %v12_v0 = vstv %s3093_s6 }
   0x2   :  { %13 = vst [vmem:[#allocation2] sm:$0x1] %v12_v0 }
   0x3   :  { %14 = vsyncpa [#allocation4], 0 }
   0x4   :  { %16 = vsyncpa [#allocation4 + $0x1], 0  ;;  %s2091_s26 = smov 0   ;;  %s2093_s27 = smov 0  }
   0x5   :  { %s2095_s28 = smov 0   ;;  %s2097_s29 = smov 0  }
   0x6 LB: > { %s2112_s6 = sadd.s32 4294967295, %s2022_s29   ;;  %s1747_s30 = sadd.s32 4294967294, %s2022_s29   ;;  %s2022_s29 = sphi %s2097_s29, %s3148_s29   ;;  %s2018_s28 = sphi %s2095_s28, %s3147_s28   ;;  %s2014_s27 = sphi %s2093_s27, %s3146_s27   ;;  %s2010_s26 = sphi %s2091_s26, %s3145_s26  }
   0x7   : > { %s2116_s8 = sadd.s32 1, %s2022_s29   ;;  %s181_s9 = sadd.s32 1, %s2018_s28 }
   0x8   : > { %s178_s10 = ssub.s32 %s2022_s29, %s2116_s8  ;;  %p191_p0 = scmp.ne.s32.totalorder %s2018_s28, %s2014_s27 }
   0x9   : > { %p179_p1 = scmp.eq.s32.totalorder %s178_s10, 0  ;;  %p192_p2 = scmp.eq.s32.totalorder %s2112_s6, 1 }
   0xa   : > { %p197_p3 = scmp.ne.s32.totalorder %s2014_s27, %s2010_s26  ;;  %p198_p4 = scmp.eq.s32.totalorder %s1747_s30, 1 }
   0xb   : > { %s2127_s11 = scalar_select %p179_p1, %s2018_s28, %s181_s9  }
   0xc   : > { %p2129_p5 = por %p192_p2, %p191_p0  ;;  %p2133_p6 = por %p198_p4, %p197_p3 }
   0xd   : > { %p1750_p7 = scmp.ge.s32.totalorder %s2022_s29, 1  ;;  %p242_p8 = scmp.lt.s32.totalorder %s2022_s29, 3 }
   0xf   : > { %p243_p9 = pnand %p1750_p7, %p242_p8 }
  0x11   : > { %246 = sbr.rel (%p243_p9) target bundleno = 481 (0x1e1), region = 48 }
  0x16   : > { %v281_v1 = vld [vmem:[%s3088_s1 + $0x8] sm:$0xff]  ;;  %v280_v2 = vld [vmem:[%s3088_s1] sm:$0xff]  ;;  %v2024_v3 = vmov 0   ;;  %v2025_v8 = vmov 1   ;;  %v2026_v9 = vmov 2   ;;  %v2027_v10 = vmov 3  }
  0x17   : > { %1886 = vset.pattern.permute.xlu1 %v2024_v3  ;;  %1885 = vset.pattern.permute.xlu0 %v2024_v3  ;;  %v287_v4 = vld [vmem:[%s3089_s2 + $0x8] sm:$0xff]  ;;  %v286_v5 = vld [vmem:[%s3089_s2] sm:$0xff]  ;;  %v2028_v11 = vmov 4   ;;  %v2029_v12 = vmov 5   ;;  %v2030_v13 = vmov 7   ;;  %v2031_v14 = vmov 8  }
  0x18   : > { %295 = vperm.xlu1 %1886, %v281_v1   ;;  %290 = vperm.xlu0 %1885, %v280_v2   ;;  %v2156_v6 = vld [vmem:[%s3090_s3 + $0x8] sm:$0xff]  ;;  %v2161_v7 = vld [vmem:[%s3090_s3] sm:$0xff]  ;;  %v2032_v15 = vmov 6   ;;  %v2033_v16 = vmov 10   ;;  %v2034_v17 = vmov 11   ;;  %v2035_v18 = vmov 13  }
  0x19   : > { %v2036_v19 = vmov 14   ;;  %v2037_v20 = vmov 9   ;;  %v771_v21 = vld [vmem:[%s3091_s4] sm:$0xff]  ;;  %v285_v22 = vld [vmem:[%s3092_s5 + $0x8] sm:$0xff]  ;;  %v2038_v23 = vmov 12   ;;  %v2039_v24 = vmov 15  }
  0x1a   : > { %v772_v25 = vld [vmem:[%s3091_s4 + $0x8] sm:$0xff]  ;;  %s1752_s17 = sshll.u32 %s2112_s6, 1  ;;  %v284_v26 = vld [vmem:[%s3092_s5] sm:$0xff]  ;;  %v3095_v27 = vlaneseq  ;;  %s270_s23 = sand.u32 1, %s2014_s27  }
  0x1b   : > { %p274_p10 = scmp.lt.s32.totalorder %s1752_s17, 3  ;;  %v1641_v28 = vld [vmem:[#allocation2] sm:$0x1]  ;;  %s1751_s24 = sshll.u32 %s270_s23, 1 }
  0x1c   : > { %320 = vperm.xlu1 %1886, %v287_v4   ;;  %315 = vperm.xlu0 %1885, %v286_v5   ;;  %v2211_v29 = vshrl.u32 %v3095_v27, 7  ;;  %v3106_v4 = vmov 683565275   ;;  %s1790_s25 = sshll.u32 %s2112_s6, 5  ;;  %s272_s30 = scalar_lea.vmem [#allocation3], %s1751_s24 }
  0x1d   : > { %s3150_s17 = smov (!%p274_p10, %s1752_s17), 3  ;;  %s1691_s9 = sshll.u32 %s272_s30, 4  ;;  %s1692_s9 = int_to_ptr.vmem [resolvable:$true] %s1691_s9 }
  0x1e   : > { %3114 = vst [vmem:[#allocation6_spill] sm:$0xff] %v2211_v29  ;;  %s276_s22 = scalar_lea.vmem %s3087_s0, %s3150_s17  ;;  %v2217_v30 = vsub.s32 0, %v2211_v29  ;;  %v2220_v31 = vsub.s32 1, %v2211_v29  ;;  %s1689_s15 = scalar_lea.hbm %s3094_s7, %s1790_s25 }
  0x1f   : > { %v279_v32 = vld [vmem:[%s276_s22] sm:$0x3]  ;;  %s1677_s16 = scalar_lea.sflag [#allocation4], %s270_s23  ;;  %s1962_s17 = scalar_lea.vmem %s1692_s9, 32 }
  0x20   : > { %780 = vperm.xlu1 %1886, %v2156_v6   ;;  %775 = vperm.xlu0 %1885, %v2161_v7   ;;  %3115 = vst [vmem:[#allocation7_spill] sm:$0xff] %v2217_v30  ;;  %v302_v33 = vrot.slane %v279_v32, %v2217_v30  ;;  %v2224_v34 = vrot.slane %v279_v32, %v2220_v31  ;;  %p1963_p11 = scmp.ne.s32.totalorder %s1692_s9, %s1962_s17  ;;  %s2047_s18 = smov [#allocation3]  }
  0x21   : > { %s1966_s6 = sshll.u32 %s2047_s18, 4  ;;  %s1967_s6 = int_to_ptr.vmem [resolvable:$false] %s1966_s6 }
  0x22   : > { %p1964_p12 = pnand %p1963_p11, %p2129_p5  ;;  %s1968_s19 = scalar_lea.vmem %s1967_s6, 64 }
  0x23   : > { %p1969_p0 = scmp.lt.s32.totalorder %s1692_s9, %s1967_s6  ;;  %p1970_p1 = scmp.lt.s32.totalorder %s1968_s19, %s1962_s17 }
  0x24   : > { %1888 = vset.pattern.permute.xlu1 %v2025_v8  ;;  %1887 = vset.pattern.permute.xlu0 %v2025_v8  ;;  %v3102_v8 = vmov 2131351028   ;;  %p1965_p13 = pneg %p1964_p12 }
  0x25   : > { %800 = vperm.xlu1 %1888, %v2156_v6   ;;  %796 = vperm.xlu0 %1887, %v2161_v7   ;;  %p1971_p2 = por %p1970_p1, %p1969_p0 }
  0x27   : > { %p1972_p3 = pnand %p1971_p2, %p1965_p13 }
  0x29   : > { %1889 = vset.pattern.permute.xlu1 %v2026_v9  ;;  %1890 = vset.pattern.permute.xlu0 %v2026_v9 }
  0x2a   : > { %820 = vperm.xlu1 %1889, %v2161_v7   ;;  %824 = vperm.xlu0 %1890, %v2156_v6  }
  0x2e   : > { %1891 = vset.pattern.permute.xlu1 %v2027_v10  ;;  %1892 = vset.pattern.permute.xlu0 %v2028_v11  ;;  %v3100_v10 = vmov 2102212464  }
  0x2f   : > { %844 = vperm.xlu1 %1891, %v2161_v7   ;;  %868 = vperm.xlu0 %1892, %v2161_v7  }
  0x33   : > { %848 = vperm.xlu1 %1891, %v2156_v6   ;;  %1895 = vset.pattern.permute.xlu0 %v2029_v12 }
  0x34   : > { %896 = vperm.xlu0 %1895, %v2156_v6  }
  0x37   : > { %1893 = vset.pattern.permute.xlu1 %v2028_v11 }
  0x38   : > { %872 = vperm.xlu1 %1893, %v2156_v6   ;;  %1897 = vset.pattern.permute.xlu0 %v2030_v13 }
  0x39   : > { %940 = vperm.xlu0 %1897, %v2161_v7  }
  0x3c   : > { %1894 = vset.pattern.permute.xlu1 %v2029_v12  ;;  %v3098_v12 = vmov 920167782  }
  0x3d   : > { %892 = vperm.xlu1 %1894, %v2161_v7   ;;  %1900 = vset.pattern.permute.xlu0 %v2031_v14 }
  0x3e   : > { %968 = vperm.xlu0 %1900, %v2156_v6  }
  0x41   : > { %1896 = vset.pattern.permute.xlu1 %v2032_v15 }
  0x42   : > { %916 = vperm.xlu1 %1896, %v2161_v7   ;;  %1902 = vset.pattern.permute.xlu0 %v2033_v16 }
  0x43   : > { %1012 = vperm.xlu0 %1902, %v2161_v7  }
  0x46   : > { %920 = vperm.xlu1 %1896, %v2156_v6  }
  0x47   : > { %1905 = vset.pattern.permute.xlu0 %v2034_v17 }
  0x48   : > { %1040 = vperm.xlu0 %1905, %v2156_v6  }
  0x4a   : > { %1898 = vset.pattern.permute.xlu1 %v2030_v13 }
  0x4b   : > { %944 = vperm.xlu1 %1898, %v2156_v6  }
  0x4c   : > { %1907 = vset.pattern.permute.xlu0 %v2035_v18 }
  0x4d   : > { %1084 = vperm.xlu0 %1907, %v2161_v7  }
  0x4f   : > { %1899 = vset.pattern.permute.xlu1 %v2031_v14 }
  0x50   : > { %964 = vperm.xlu1 %1899, %v2161_v7  }
  0x51   : > { %1910 = vset.pattern.permute.xlu0 %v2036_v19 }
  0x52   : > { %1112 = vperm.xlu0 %1910, %v2156_v6  }
  0x54   : > { %1901 = vset.pattern.permute.xlu1 %v2037_v20  ;;  %v3096_v20 = vmov 1326507024  }
  0x55   : > { %988 = vperm.xlu1 %1901, %v2161_v7  }
  0x56   : > { %1912 = vset.pattern.permute.xlu0 %v2024_v3 }
  0x57   : > { %1157 = vperm.xlu0 %1912, %v771_v21  }
  0x59   : > { %992 = vperm.xlu1 %1901, %v2156_v6  }
  0x5b   : > { %1620 = vperm.xlu0 %1912, %v285_v22  }
  0x5d   : > { %1903 = vset.pattern.permute.xlu1 %v2033_v16 }
  0x5e   : > { %1016 = vperm.xlu1 %1903, %v2156_v6  }
  0x62   : > { %1904 = vset.pattern.permute.xlu1 %v2034_v17 }
  0x63   : > { %1036 = vperm.xlu1 %1904, %v2161_v7  }
  0x67   : > { %1906 = vset.pattern.permute.xlu1 %v2038_v23 }
  0x68   : > { %1060 = vperm.xlu1 %1906, %v2161_v7  }
  0x6c   : > { %1064 = vperm.xlu1 %1906, %v2156_v6  }
  0x70   : > { %1908 = vset.pattern.permute.xlu1 %v2035_v18 }
  0x71   : > { %1088 = vperm.xlu1 %1908, %v2156_v6  }
  0x75   : > { %1909 = vset.pattern.permute.xlu1 %v2036_v19 }
  0x76   : > { %1108 = vperm.xlu1 %1909, %v2161_v7  }
  0x7a   : > { %1911 = vset.pattern.permute.xlu1 %v2039_v24 }
  0x7b   : > { %1132 = vperm.xlu1 %1911, %v2161_v7  }
  0x7f   : > { %1136 = vperm.xlu1 %1911, %v2156_v6   ;;  %v3104_v6 = vmov 2475754826  }
  0x83   : > { %1913 = vset.pattern.permute.xlu1 %v2024_v3 }
  0x84   : > { %1162 = vperm.xlu1 %1913, %v772_v25  }
  0x88   : > { %1615 = vperm.xlu1 %1913, %v284_v26  }
  0x8c   : > { %1644 = vperm.xlu1 %1913, %v1641_v28  }
  0x93   : > { %v296_v35 = vpop.permute.xlu1 %295  ;;  %v2227_v38 = vpop.permute.xlu0 %290 }
  0x94   : > { %v311_v36 = vmul.f32 %v302_v33, %v296_v35  ;;  %v312_v37 = vmul.f32 %v2224_v34, %v296_v35  ;;  %v309_v45 = vmul.f32 %v302_v33, %v2227_v38 }
  0x97   : > { %v321_v39 = vpop.permute.xlu1 %320  ;;  %v2235_v44 = vpop.permute.xlu0 %315 }
  0x98   : > { %v2229_v40 = vadd.f32 %v321_v39, %v311_v36  ;;  %v2231_v41 = vadd.f32 %v321_v39, %v312_v37  ;;  %v2243_v51 = vadd.f32 %v2235_v44, %v309_v45 }
  0x9a   : > { %v535_v42 = vand.u32 2147483647, %v2229_v40  ;;  %v538_v43 = vand.u32 2139095040, %v2229_v40  ;;  %v642_v46 = vand.u32 2139095040, %v2231_v41  ;;  %v639_v49 = vand.u32 2147483647, %v2231_v41 }
  0x9b   : > { %v330_v58 = vand.u32 2139095040, %v2243_v51 }
  0x9c   : > { %v539_v47 = vshrl.u32 %v538_v43, 23  ;;  %v542_v48 = vand.u32 8388607, %v535_v42  ;;  %v643_v50 = vshrl.u32 %v642_v46, 23  ;;  %v2247_v56 = vand.u32 8388607, %v639_v49 }
  0x9d   : > { %v331_v2 = vshrl.u32 %v330_v58, 23 }
  0x9e   : > { %v1761_v52 = vadd.s32 4294967169, %v539_v47  ;;  %v1765_v53 = vadd.s32 4294967169, %v643_v50  ;;  %v543_v55 = vor.u32 8388608, %v542_v48  ;;  %v647_v0 = vor.u32 8388608, %v2247_v56 }
  0xa0   : > { %v545_v54 = vadd.s32 1, %v1761_v52  ;;  %v649_v57 = vadd.s32 1, %v1765_v53  ;;  %v2250_v63 = vshll.u32 %v543_v55, 8  ;;  %v1753_v52 = vadd.s32 4294967169, %v331_v2 }
  0xa2   : > { %vm546_vm0 = vcmp.gt.s32.totalorder %v545_v54, 0  ;;  %vm650_vm1 = vcmp.gt.s32.totalorder %v649_v57, 0 }
  0xa3   : > { %v547_v59 = vsel %vm546_vm0, %v545_v54, 0  ;;  %v651_v62 = vsel %vm650_vm1, %v649_v57, 0 }
  0xa4   : > { %v548_v60 = vshrl.u32 %v547_v59, 5  ;;  %v549_v61 = vand.u32 31, %v547_v59  ;;  %v653_v1 = vand.u32 31, %v651_v62  ;;  %v2258_v14 = vshrl.u32 %v651_v62, 5 }
  0xa6   : > { %v550_v3 = vsub.s32 32, %v549_v61  ;;  %v552_v5 = vshll.u32 %v3106_v4, %v549_v61  ;;  %v555_v7 = vshll.u32 %v3104_v6, %v549_v61  ;;  %v558_v9 = vshll.u32 %v3102_v8, %v549_v61 }
  0xa7   : > { %v561_v11 = vshll.u32 %v3100_v10, %v549_v61  ;;  %v564_v13 = vshll.u32 %v3098_v12, %v549_v61  ;;  %vm567_vm2 = vcmp.lt.s32.totalorder %v548_v60, 1  ;;  %vm569_vm3 = vcmp.lt.s32.totalorder %v548_v60, 3 }
  0xa8   : > { %v551_v15 = vshrl.u32 %v3106_v4, %v550_v3  ;;  %v553_v16 = vshrl.u32 %v3104_v6, %v550_v3  ;;  %v556_v17 = vshrl.u32 %v3102_v8, %v550_v3  ;;  %v559_v18 = vshrl.u32 %v3100_v10, %v550_v3 }
  0xa9   : > { %v562_v19 = vshrl.u32 %v3098_v12, %v550_v3  ;;  %v565_v21 = vshrl.u32 %v3096_v20, %v550_v3  ;;  %vm570_vm4 = vcmp.lt.s32.totalorder %v548_v60, 4  ;;  %v654_v25 = vsub.s32 32, %v653_v1 }
  0xaa   : > { %v554_v22 = vor.u32 %v553_v16, %v552_v5  ;;  %v557_v23 = vor.u32 %v556_v17, %v555_v7  ;;  %v560_v24 = vor.u32 %v559_v18, %v558_v9  ;;  %vm568_vm5 = vcmp.lt.s32.totalorder %v548_v60, 2 }
  0xab   : > { %v563_v26 = vor.u32 %v562_v19, %v561_v11  ;;  %v566_v28 = vor.u32 %v565_v21, %v564_v13  ;;  %v656_v32 = vshll.u32 %v3106_v4, %v653_v1  ;;  %v659_v46 = vshll.u32 %v3104_v6, %v653_v1 }
  0xac   : > { %v571_v33 = vsel %vm567_vm2, %v551_v15, %v554_v22  ;;  %v572_v35 = vsel %vm570_vm4, %v560_v24, 2102212464  ;;  %v575_v36 = vsel %vm567_vm2, %v554_v22, %v557_v23  ;;  %v579_v37 = vsel %vm567_vm2, %v557_v23, %v560_v24 }
  0xad   : > { %v573_v39 = vsel %vm569_vm3, %v557_v23, %v572_v35  ;;  %v576_v43 = vsel %vm570_vm4, %v563_v26, 920167782  ;;  %v580_v45 = vsel %vm570_vm4, %v566_v28, 1326507024  ;;  %v657_v50 = vshrl.u32 %v3104_v6, %v654_v25 }
  0xae   : > { %v577_v47 = vsel %vm569_vm3, %v560_v24, %v576_v43  ;;  %v581_v48 = vsel %vm569_vm3, %v563_v26, %v580_v45  ;;  %v574_v53 = vsel %vm568_vm5, %v571_v33, %v573_v39  ;;  %v660_v57 = vshrl.u32 %v3102_v8, %v654_v25 }
  0xaf   : > { %v578_v54 = vsel %vm568_vm5, %v575_v36, %v577_v47  ;;  %v582_v55 = vsel %vm568_vm5, %v579_v37, %v581_v48  ;;  %v658_v3 = vor.u32 %v657_v50, %v656_v32  ;;  %v662_v2 = vshll.u32 %v3102_v8, %v653_v1 }
  0xb0   : > { %v2280_v58 = vmul.u32.u64.low %v2250_v63, %v582_v55  ;;  %v2281_v59 = vmul.u32.u64.high %v2250_v63, %v582_v55, %v2280_v58  ;;  %v2284_v61 = vmul.u32.u64.low %v2250_v63, %v578_v54  ;;  %v2285_v62 = vmul.u32.u64.high %v2250_v63, %v578_v54, %v2284_v61 }
  0xb1   : > { %v661_v5 = vor.u32 %v660_v57, %v659_v46  ;;  %v663_v7 = vshrl.u32 %v3100_v10, %v654_v25  ;;  %v665_v60 = vshll.u32 %v3100_v10, %v653_v1  ;;  %v666_v9 = vshrl.u32 %v3098_v12, %v654_v25 }
  0xb2   : > { %v668_v11 = vshll.u32 %v3098_v12, %v653_v1  ;;  %v669_v13 = vshrl.u32 %v3096_v20, %v654_v25  ;;  %v590_v15 = vmul.u32 %v2250_v63, %v574_v53  ;;  %v655_v16 = vshrl.u32 %v3106_v4, %v654_v25 }
  0xb3   : > { %v664_v17 = vor.u32 %v663_v7, %v662_v2  ;;  %vm671_vm6 = vcmp.lt.s32.totalorder %v2258_v14, 1  ;;  %vm592_vm7 = vc.u32 %v2281_v59, %v2284_v61  ;;  %v593_v18 = vadd.s32 1, %v2285_v62  ;;  %v2341_v2 = vpop.permute.xlu1 %780 }
  0xb4   : > { %v667_v19 = vor.u32 %v666_v9, %v665_v60  ;;  %vm673_vm8 = vcmp.lt.s32.totalorder %v2258_v14, 3  ;;  %v670_v21 = vor.u32 %v669_v13, %v668_v11  ;;  %vm672_vm9 = vcmp.lt.s32.totalorder %v2258_v14, 2 }
  0xb5   : > { %vm674_vm10 = vcmp.lt.s32.totalorder %v2258_v14, 4  ;;  %v679_v63 = vsel %vm671_vm6, %v658_v3, %v661_v5  ;;  %v594_v1 = vsel %vm592_vm7, %v593_v18, %v2285_v62  ;;  %v683_v24 = vsel %vm671_vm6, %v661_v5, %v664_v17 }
  0xb6   : > { %v676_v22 = vsel %vm674_vm10, %v664_v17, 2102212464  ;;  %v680_v23 = vsel %vm674_vm10, %v667_v19, 920167782  ;;  %v595_v25 = vadd.s32 %v594_v1, %v590_v15  ;;  %v684_v28 = vsel %vm674_vm10, %v670_v21, 1326507024 }
  0xb7   : > { %v681_v26 = vsel %vm673_vm8, %v664_v17, %v680_v23  ;;  %v687_v32 = vshll.u32 %v647_v0, 8  ;;  %v675_v33 = vsel %vm671_vm6, %v655_v16, %v658_v3  ;;  %v677_v35 = vsel %vm673_vm8, %v661_v5, %v676_v22 }
  0xb8   : > { %v682_v36 = vsel %vm672_vm9, %v679_v63, %v681_v26  ;;  %v685_v37 = vsel %vm673_vm8, %v667_v19, %v684_v28  ;;  %v596_v39 = vadd.s32 536870912, %v595_v25  ;;  %v337_v47 = vadd.s32 1, %v1753_v52  ;;  %v2352_v19 = vpop.permute.xlu1 %800 }
  0xb9   : > { %v686_v43 = vsel %vm672_vm9, %v683_v24, %v685_v37  ;;  %v2322_v45 = vmul.u32.u64.low %v687_v32, %v682_v36  ;;  %v2323_v46 = vmul.u32.u64.high %v687_v32, %v682_v36, %v2322_v45  ;;  %v678_v50 = vsel %vm672_vm9, %v675_v33, %v677_v35 }
  0xba   : > { %v2326_v56 = vmul.u32.u64.low %v687_v32, %v686_v43  ;;  %v2327_v0 = vmul.u32.u64.high %v687_v32, %v686_v43, %v2326_v56  ;;  %v2329_v48 = vshrl.u32 %v596_v39, 30  ;;  %vm338_vm11 = vcmp.gt.s32.totalorder %v337_v47, 0 }
  0xbb   : > { %v697_v54 = vadd.s32 1, %v2323_v46  ;;  %v339_v55 = vsel %vm338_vm11, %v337_v47, 0  ;;  %v694_v57 = vmul.u32 %v687_v32, %v678_v50  ;;  %v327_v60 = vand.u32 2147483647, %v2243_v51 }
  0xbc   : > { %v598_v53 = vshll.u32 %v2329_v48, 30  ;;  %vm696_vm12 = vc.u32 %v2327_v0, %v2322_v45  ;;  %v341_v58 = vand.u32 31, %v339_v55  ;;  %v310_v11 = vmul.f32 %v2224_v34, %v2227_v38  ;;  %v2370_v56 = vpop.permute.xlu1 %820 }
  0xbd   : > { %v698_v52 = vsel %vm696_vm12, %v697_v54, %v2323_v46  ;;  %v334_v1 = vand.u32 8388607, %v327_v60  ;;  %v340_v26 = vshrl.u32 %v339_v55, 5  ;;  %vm537_vm10 = vcmp.lt.s32.totalorder %v2229_v40, 0 }
  0xbe   : > { %v2337_v62 = vsub.s32 %v595_v25, %v598_v53  ;;  %v699_v3 = vadd.s32 %v698_v52, %v694_v57  ;;  %v342_v14 = vsub.s32 32, %v341_v58  ;;  %v2356_v63 = vadd.f32 %v2235_v44, %v310_v11 }
  0xbf   : > { %v344_v22 = vshll.u32 %v3106_v4, %v341_v58  ;;  %v347_v23 = vshll.u32 %v3104_v6, %v341_v58  ;;  %v353_v24 = vshll.u32 %v3100_v10, %v341_v58  ;;  %v350_v28 = vshll.u32 %v3102_v8, %v341_v58 }
  0xc0   : > { %v601_v5 = vsub.s32 0, %v2337_v62  ;;  %v700_v7 = vadd.s32 536870912, %v699_v3  ;;  %v345_v16 = vshrl.u32 %v3104_v6, %v342_v14  ;;  %v348_v17 = vshrl.u32 %v3102_v8, %v342_v14 }
  0xc1   : > { %v354_v18 = vshrl.u32 %v3098_v12, %v342_v14  ;;  %v351_v34 = vshrl.u32 %v3100_v10, %v342_v14  ;;  %v357_v44 = vshrl.u32 %v3096_v20, %v342_v14  ;;  %v356_v39 = vshll.u32 %v3098_v12, %v341_v58 }
  0xc2   : > { %v1762_v9 = vmin.u32 %v601_v5, %v2337_v62  ;;  %v2347_v13 = vshrl.u32 %v700_v7, 30  ;;  %v346_v32 = vor.u32 %v345_v16, %v344_v22  ;;  %v349_v33 = vor.u32 %v348_v17, %v347_v23 }
  0xc3   : > { %v355_v35 = vor.u32 %v354_v18, %v353_v24  ;;  %v352_v37 = vor.u32 %v351_v34, %v350_v28  ;;  %v335_v46 = vor.u32 8388608, %v334_v1  ;;  %v358_v50 = vor.u32 %v357_v44, %v356_v39  ;;  %v2379_v1 = vpop.permute.xlu1 %844 }
  0xc4   : > { %v603_v15 = vclz %v1762_v9  ;;  %v702_v21 = vshll.u32 %v2347_v13, 30  ;;  %vm359_vm14 = vcmp.lt.s32.totalorder %v340_v26, 1  ;;  %vm362_vm15 = vcmp.lt.s32.totalorder %v340_v26, 4 }
  0xc5   : > { %v367_v53 = vsel %vm359_vm14, %v346_v32, %v349_v33  ;;  %v368_v54 = vsel %vm362_vm15, %v355_v35, 920167782  ;;  %v434_v55 = vand.u32 2139095040, %v2356_v63  ;;  %vm361_vm0 = vcmp.lt.s32.totalorder %v340_v26, 3 }
  0xc6   : > { %v1763_v38 = vadd.s32 4294967294, %v603_v15  ;;  %v2364_v25 = vsub.s32 %v699_v3, %v702_v21  ;;  %v364_v52 = vsel %vm362_vm15, %v352_v37, 2102212464  ;;  %v343_v3 = vshrl.u32 %v3106_v4, %v342_v14 }
  0xc7   : > { %vm360_vm1 = vcmp.lt.s32.totalorder %v340_v26, 2  ;;  %v369_v58 = vsel %vm361_vm0, %v352_v37, %v368_v54  ;;  %v371_v5 = vsel %vm359_vm14, %v349_v33, %v352_v37  ;;  %v372_v11 = vsel %vm362_vm15, %v358_v50, 1326507024 }
  0xc8   : > { %vm1764_vm13 = vcmp.lt.s32.totalorder %v1763_v38, 0  ;;  %v705_v36 = vsub.s32 0, %v2364_v25  ;;  %v370_v9 = vsel %vm360_vm1, %v367_v53, %v369_v58  ;;  %v375_v15 = vshll.u32 %v335_v46, 8  ;;  %v2393_v46 = vpop.permute.xlu1 %848 }
  0xc9   : > { %v606_v43 = vsel %vm1764_vm13, 0, %v1763_v38  ;;  %v363_v16 = vsel %vm359_vm14, %v343_v3, %v346_v32  ;;  %v365_v17 = vsel %vm361_vm0, %v349_v33, %v364_v52  ;;  %v373_v18 = vsel %vm361_vm0, %v355_v35, %v372_v11 }
  0xca   : > { %v1766_v47 = vmin.u32 %v705_v36, %v2364_v25  ;;  %v611_v57 = vsub.s32 4294967266, %v606_v43  ;;  %v435_v21 = vshrl.u32 %v434_v55, 23  ;;  %v374_v38 = vsel %vm360_vm1, %v371_v5, %v373_v18 }
  0xcb   : > { %v2382_v14 = vmul.u32.u64.low %v375_v15, %v370_v9  ;;  %v2383_v22 = vmul.u32.u64.high %v375_v15, %v370_v9, %v2382_v14  ;;  %v2386_v23 = vmul.u32.u64.low %v375_v15, %v374_v38  ;;  %v2387_v24 = vmul.u32.u64.high %v375_v15, %v374_v38, %v2386_v23 }
  0xcc   : > { %v707_v7 = vclz %v1766_v47  ;;  %v612_v34 = vadd.s32 127, %v611_v57  ;;  %v366_v44 = vsel %vm360_vm1, %v363_v16, %v365_v17  ;;  %v1757_v36 = vadd.s32 4294967169, %v435_v21 }
  0xcd   : > { %v607_v32 = vsub.s32 32, %v606_v43  ;;  %v385_v35 = vadd.s32 1, %v2383_v22  ;;  %v382_v39 = vmul.u32 %v375_v15, %v366_v44  ;;  %vm384_vm2 = vc.u32 %v2387_v24, %v2382_v14 }
  0xce   : > { %v1767_v28 = vadd.s32 4294967294, %v707_v7  ;;  %v613_v33 = vshll.u32 %v612_v34, 23  ;;  %v441_v37 = vadd.s32 1, %v1757_v36  ;;  %v591_v47 = vadd.s32 %v2284_v61, %v2281_v59  ;;  %v2404_v59 = vpop.permute.xlu1 %872 }
  0xcf   : > { %v386_v50 = vsel %vm384_vm2, %v385_v35, %v2383_v22  ;;  %v431_v57 = vand.u32 2147483647, %v2356_v63  ;;  %v608_v5 = vshll.u32 %v2337_v62, %v606_v43  ;;  %vm2461_vm12 = vcmp.le.f32.partialorder %v535_v42, 0.7853982 }
  0xd0   : > { %vm1768_vm3 = vcmp.lt.s32.totalorder %v1767_v28, 0  ;;  %vm442_vm4 = vcmp.gt.s32.totalorder %v441_v37, 0  ;;  %v387_v26 = vadd.s32 %v386_v50, %v382_v39  ;;  %v609_v54 = vshrl.u32 %v591_v47, %v607_v32 }
  0xd1   : > { %v443_v53 = vsel %vm442_vm4, %v441_v37, 0  ;;  %v614_v55 = vor.u32 4788187, %v613_v33  ;;  %v2399_v52 = vsel %vm1768_vm3, 0, %v1767_v28  ;;  %v438_v16 = vand.u32 8388607, %v431_v57 }
  0xd2   : > { %v388_v3 = vadd.s32 536870912, %v387_v26  ;;  %v445_v58 = vand.u32 31, %v443_v53  ;;  %v610_v61 = vor.u32 %v609_v54, %v608_v5  ;;  %v715_v15 = vsub.s32 4294967266, %v2399_v52 }
  0xd3   : > { %v615_v11 = vand.u32 2147483647, %v614_v55  ;;  %v444_v18 = vshrl.u32 %v443_v53, 5  ;;  %v439_v32 = vor.u32 8388608, %v438_v16  ;;  %v2423_v53 = vpop.permute.xlu1 %892  ;;  %v711_v55 = vsub.s32 32, %v2399_v52 }
  0xd4   : > { %v2402_v7 = vshrl.u32 %v388_v3, 30  ;;  %v446_v9 = vsub.s32 32, %v445_v58  ;;  %v448_v21 = vshll.u32 %v3106_v4, %v445_v58  ;;  %v451_v62 = vshll.u32 %v3104_v6, %v445_v58 }
  0xd5   : > { %v454_v28 = vshll.u32 %v3102_v8, %v445_v58  ;;  %v457_v44 = vshll.u32 %v3100_v10, %v445_v58  ;;  %v460_v37 = vshll.u32 %v3098_v12, %v445_v58  ;;  %v617_v54 = vcvt.s32.f32 %v610_v61 }
  0xd6   : > { %v390_v17 = vshll.u32 %v2402_v7, 30  ;;  %v449_v34 = vshrl.u32 %v3104_v6, %v446_v9  ;;  %v452_v43 = vshrl.u32 %v3102_v8, %v446_v9  ;;  %v455_v38 = vshrl.u32 %v3100_v10, %v446_v9 }
  0xd7   : > { %v458_v22 = vshrl.u32 %v3098_v12, %v446_v9  ;;  %v461_v36 = vshrl.u32 %v3096_v20, %v446_v9  ;;  %v716_v5 = vadd.s32 127, %v715_v15  ;;  %vm463_vm5 = vcmp.lt.s32.totalorder %v444_v18, 1 }
  0xd8   : > { %v2416_v23 = vsub.s32 %v387_v26, %v390_v17  ;;  %v450_v33 = vor.u32 %v449_v34, %v448_v21  ;;  %v453_v35 = vor.u32 %v452_v43, %v451_v62  ;;  %v456_v47 = vor.u32 %v455_v38, %v454_v28 }
  0xd9   : > { %v459_v50 = vor.u32 %v458_v22, %v457_v44  ;;  %v695_v26 = vadd.s32 %v2322_v45, %v2327_v0  ;;  %v462_v3 = vor.u32 %v461_v36, %v460_v37  ;;  %vm466_vm6 = vcmp.lt.s32.totalorder %v444_v18, 4  ;;  %v2434_v44 = vpop.permute.xlu1 %916 }
  0xda   : > { %v393_v39 = vsub.s32 0, %v2416_v23  ;;  %v618_v17 = vmul.f32 %v617_v54, %v615_v11  ;;  %v471_v58 = vsel %vm463_vm5, %v450_v33, %v453_v35  ;;  %v479_v34 = vshll.u32 %v439_v32, 8 }
  0xdb   : > { %v472_v21 = vsel %vm466_vm6, %v459_v50, 920167782  ;;  %v447_v43 = vshrl.u32 %v3106_v4, %v446_v9  ;;  %vm465_vm7 = vcmp.lt.s32.totalorder %v444_v18, 3  ;;  %v468_v61 = vsel %vm466_vm6, %v456_v47, 2102212464 }
  0xdc   : > { %v1754_v16 = vmin.u32 %v393_v39, %v2416_v23  ;;  %vm464_vm8 = vcmp.lt.s32.totalorder %v444_v18, 2  ;;  %v473_v45 = vsel %vm465_vm7, %v456_v47, %v472_v21  ;;  %v475_v0 = vsel %vm463_vm5, %v453_v35, %v456_v47 }
  0xdd   : > { %v476_v38 = vsel %vm466_vm6, %v462_v3, 1326507024  ;;  %v717_v15 = vshll.u32 %v716_v5, 23  ;;  %v467_v28 = vsel %vm463_vm5, %v447_v43, %v450_v33  ;;  %v474_v11 = vsel %vm464_vm8, %v471_v58, %v473_v45 }
  0xde   : > { %v395_v62 = vclz %v1754_v16  ;;  %v469_v36 = vsel %vm465_vm7, %v453_v35, %v468_v61  ;;  %v477_v32 = vsel %vm465_vm7, %v459_v50, %v476_v38  ;;  %v712_v9 = vshll.u32 %v2364_v25, %v2399_v52  ;;  %v2451_v61 = vpop.permute.xlu1 %920 }
  0xdf   : > { %v2436_v37 = vmul.u32.u64.low %v479_v34, %v474_v11  ;;  %v2437_v39 = vmul.u32.u64.high %v479_v34, %v474_v11, %v2436_v37  ;;  %v713_v54 = vshrl.u32 %v695_v26, %v711_v55  ;;  %v478_v47 = vsel %vm464_vm8, %v475_v0, %v477_v32 }
  0xe0   : > { %v1755_v22 = vadd.s32 4294967294, %v395_v62  ;;  %v383_v33 = vadd.s32 %v2382_v14, %v2387_v24  ;;  %v2445_v5 = vmul.u32.u64.low %v479_v34, %v478_v47  ;;  %v2446_v16 = vmul.u32.u64.high %v479_v34, %v478_v47, %v2445_v5 }
  0xe1   : > { %v718_v35 = vor.u32 4788187, %v717_v15  ;;  %v470_v21 = vsel %vm464_vm8, %v467_v28, %v469_v36  ;;  %v619_v62 = vxor.u32 2147483648, %v618_v17  ;;  %v489_v43 = vadd.s32 1, %v2437_v39 }
  0xe2   : > { %vm1756_vm9 = vcmp.lt.s32.totalorder %v1755_v22, 0  ;;  %v714_v25 = vor.u32 %v713_v54, %v712_v9  ;;  %v486_v14 = vmul.u32 %v479_v34, %v470_v21  ;;  %vm488_vm11 = vc.u32 %v2446_v16, %v2436_v37 }
  0xe3   : > { %v398_v3 = vsel %vm1756_vm9, 0, %v1755_v22  ;;  %v719_v24 = vand.u32 2147483647, %v718_v35  ;;  %v490_v0 = vsel %vm488_vm11, %v489_v43, %v2437_v39  ;;  %v620_v38 = vsel %vm537_vm10, %v619_v62, %v618_v17  ;;  %v2469_v17 = vpop.permute.xlu1 %944  ;;  %v2484_v43 = vpop.permute.xlu0 %775 }
  0xe4   : > { %v399_v50 = vsub.s32 32, %v398_v3  ;;  %v403_v58 = vsub.s32 4294967266, %v398_v3  ;;  %v400_v52 = vshll.u32 %v2416_v23, %v398_v3  ;;  %v491_v15 = vadd.s32 %v490_v0, %v486_v14 }
  0xe5   : > { %v721_v23 = vcvt.s32.f32 %v714_v25  ;;  %v747_v11 = vsub.f32 0.0, %v2243_v51  ;;  %v623_v36 = vsel %vm2461_vm12, %v2229_v40, %v620_v38  ;;  %v621_v42 = vsub.s32 4, %v2329_v48 }
  0xe6   : > { %v401_v26 = vshrl.u32 %v383_v33, %v399_v50  ;;  %v404_v55 = vadd.s32 127, %v403_v58  ;;  %v492_v34 = vadd.s32 536870912, %v491_v15  ;;  %1914 = vcosq.f32 %v623_v36 }
  0xe7   : > { %v722_v32 = vmul.f32 %v721_v23, %v719_v24  ;;  %1916 = vsinq.f32 %v623_v36  ;;  %v751_v35 = vmul.f32 %v747_v11, %v2243_v51  ;;  %vm329_vm13 = vcmp.lt.s32.totalorder %v2243_v51, 0  ;;  %v2486_v25 = vpop.permute.xlu1 %964  ;;  %v2505_v38 = vpop.permute.xlu0 %796 }
  0xe8   : > { %v402_v45 = vor.u32 %v401_v26, %v400_v52  ;;  %v405_v18 = vshll.u32 %v404_v55, 23  ;;  %v2471_v54 = vshrl.u32 %v492_v34, 30  ;;  %v413_v50 = vsub.s32 4, %v2402_v7 }
  0xe9   : > { %v723_v3 = vxor.u32 2147483648, %v722_v32  ;;  %vm2480_vm14 = vcmp.le.f32.partialorder %v327_v60, 0.7853982  ;;  %vm641_vm15 = vcmp.lt.s32.totalorder %v2231_v41, 0  ;;  %v622_v55 = vsel %vm537_vm10, %v621_v42, %v2329_v48 }
  0xea   : > { %v406_v22 = vor.u32 4788187, %v405_v18  ;;  %v409_v9 = vcvt.s32.f32 %v402_v45  ;;  %v494_v33 = vshll.u32 %v2471_v54, 30  ;;  %v755_v14 = vmul.f32 0.5, %v751_v35 }
  0xeb   : > { %v724_v60 = vsel %vm641_vm15, %v723_v3, %v722_v32  ;;  %v749_v24 = vsub.f32 0.0, %v2229_v40  ;;  %v414_v45 = vsel %vm329_vm13, %v413_v50, %v2402_v7  ;;  %vm2501_vm0 = vcmp.le.f32.partialorder %v639_v49, 0.7853982  ;;  %v2516_v11 = vpop.permute.xlu1 %988  ;;  %v2523_v3 = vpop.permute.xlu0 %824 }
  0xec   : > { %v407_v39 = vand.u32 2147483647, %v406_v22  ;;  %v495_v58 = vsub.s32 %v491_v15, %v494_v33  ;;  %v624_v48 = vsel %vm2461_vm12, 0, %v622_v55  ;;  %v725_v15 = vsub.s32 4, %v2347_v13 }
  0xed   : > { %v727_v23 = vsel %vm2501_vm0, %v2231_v41, %v724_v60  ;;  %v750_v22 = vsub.f32 0.0, %v2231_v41  ;;  %v416_v49 = vsel %vm2480_vm14, 0, %v414_v45  ;;  %v759_v34 = vmul.f32 1.442695, %v755_v14 }
  0xee   : > { %v410_v47 = vmul.f32 %v409_v9, %v407_v39  ;;  %v497_v26 = vsub.s32 0, %v495_v58  ;;  %v753_v36 = vmul.f32 %v749_v24, %v2229_v40  ;;  %v628_v28 = vadd.s32 3, %v624_v48 }
  0xef   : > { %v726_v39 = vsel %vm641_vm15, %v725_v15, %v2347_v13  ;;  %v420_v9 = vadd.s32 3, %v416_v49  ;;  %v754_v42 = vmul.f32 %v750_v22, %v2231_v41  ;;  %v487_v50 = vadd.s32 %v2436_v37, %v2446_v16  ;;  %v2531_v0 = vpop.permute.xlu0 %868 }
  0xf0   : > { %v411_v5 = vxor.u32 2147483648, %v410_v47  ;;  %v1758_v18 = vmin.u32 %v497_v26, %v495_v58  ;;  %v757_v35 = vmul.f32 0.5, %v753_v36  ;;  %v728_v13 = vsel %vm2501_vm0, 0, %v726_v39  ;;  %v2529_v26 = vpop.permute.xlu1 %992 }
  0xf1   : > { %v421_v55 = vand.u32 3, %v420_v9  ;;  %v758_v15 = vmul.f32 0.5, %v754_v42  ;;  %v732_v16 = vadd.s32 3, %v728_v13  ;;  %vm419_vm8 = vweird.f32 %v2243_v51 }
  0xf2   : > { %v412_v62 = vsel %vm329_vm13, %v411_v5, %v410_v47  ;;  %v499_v7 = vclz %v1758_v18  ;;  %vm627_vm9 = vweird.f32 %v2229_v40  ;;  %vm433_vm10 = vcmp.lt.s32.totalorder %v2356_v63, 0 }
  0xf3   : > { %v415_v52 = vsel %vm2480_vm14, %v2243_v51, %v412_v62  ;;  %v1915_v47 = vpop.eup %1914  ;;  %vm426_vm4 = vcmp.eq.s32.totalorder %v421_v55, 2  ;;  %vm423_vm5 = vcmp.eq.s32.totalorder %v421_v55, 0  ;;  %vm422_vm6 = vcmp.lt.s32.totalorder %v421_v55, 2 }
  0xf4   : > { %1918 = vcosq.f32 %v415_v52  ;;  %v1759_v32 = vadd.s32 4294967294, %v499_v7  ;;  %v1917_v5 = vpop.eup %1916  ;;  %v635_v18 = vxor.u32 2147483648, %v1915_v47  ;;  %v2534_v9 = vpop.permute.xlu1 %1016  ;;  %vm2549_vm11 = vcmp.le.f32.partialorder %v431_v57, 0.7853982 }
  0xf5   : > { %1920 = vsinq.f32 %v415_v52  ;;  %v629_v52 = vand.u32 3, %v628_v28  ;;  %v632_v45 = vxor.u32 2147483648, %v1917_v5  ;;  %v517_v40 = vsub.s32 4, %v2471_v54 }
  0xf6   : > { %1922 = vcosq.f32 %v727_v23  ;;  %vm1760_vm1 = vcmp.lt.s32.totalorder %v1759_v32, 0  ;;  %vm731_vm15 = vweird.f32 %v2231_v41 }
  0xf7   : > { %1924 = vsinq.f32 %v727_v23  ;;  %v502_v33 = vsel %vm1760_vm1, 0, %v1759_v32  ;;  %v763_v23 = vmul.f32 1.442695, %v757_v35  ;;  %vm631_vm2 = vcmp.eq.s32.totalorder %v629_v52, 0 }
  0xf8   : > { %1926 = vpow2.f32 %v759_v34  ;;  %v503_v21 = vsub.s32 32, %v502_v33  ;;  %v507_v62 = vsub.s32 4294967266, %v502_v33  ;;  %v504_v60 = vshll.u32 %v495_v58, %v502_v33 }
  0xf9   : > { %vm634_vm3 = vcmp.eq.s32.totalorder %v629_v52, 2  ;;  %v748_v58 = vsub.f32 0.0, %v2356_v63  ;;  %v633_v32 = vsel %vm631_vm2, %v1915_v47, %v632_v45  ;;  %vm630_vm7 = vcmp.lt.s32.totalorder %v629_v52, 2 }
  0xfa   : > { %v505_v14 = vshrl.u32 %v487_v50, %v503_v21  ;;  %v508_v24 = vadd.s32 127, %v507_v62  ;;  %v636_v28 = vsel %vm634_vm3, %v635_v18, %v1917_v5  ;;  %1928 = vpow2.f32 %v763_v23 }
  0xfb   : > { %v637_v62 = vsel %vm630_vm7, %v633_v32, %v636_v28  ;;  %v752_v47 = vmul.f32 %v748_v58, %v2356_v63  ;;  %v733_v52 = vand.u32 3, %v732_v16  ;;  %v2545_v18 = vsub.s32 2, %v2211_v29 }
  0xfc   : > { %v506_v7 = vor.u32 %v505_v14, %v504_v60  ;;  %v509_v22 = vshll.u32 %v508_v24, 23  ;;  %v2539_v14 = vmul.f32 1.442695, %v758_v15  ;;  %v2541_v24 = vpop.permute.xlu0 %896  ;;  %v2568_v28 = vsub.s32 4, %v2211_v29 }
  0xfd   : > { %v756_v16 = vmul.f32 0.5, %v752_v47  ;;  %vm734_vm12 = vcmp.lt.s32.totalorder %v733_v52, 2  ;;  %vm735_vm13 = vcmp.eq.s32.totalorder %v733_v52, 0  ;;  %vm738_vm14 = vcmp.eq.s32.totalorder %v733_v52, 2 }
  0xfe   : > { %v510_v36 = vor.u32 4788187, %v509_v22  ;;  %v513_v35 = vcvt.s32.f32 %v506_v7  ;;  %v2554_v7 = vpop.permute.xlu1 %1036  ;;  %vm523_vm3 = vweird.f32 %v2356_v63 }
  0xff   : > { %v761_v47 = vmul.f32 1.442695, %v756_v16  ;;  %v2594_v16 = vsub.s32 7, %v2211_v29 }
 0x100   : > { %v511_v33 = vand.u32 2147483647, %v510_v36 }
 0x101   : > { %v1919_v48 = vpop.eup %1918 }
 0x102   : > { %v1921_v37 = vpop.eup %1920  ;;  %v427_v49 = vxor.u32 2147483648, %v1919_v48  ;;  %v514_v60 = vmul.f32 %v513_v35, %v511_v33 }
 0x103   : > { %v424_v34 = vxor.u32 2147483648, %v1921_v37  ;;  %v1923_v21 = vpop.eup %1922 }
 0x104   : > { %v428_v39 = vsel %vm426_vm4, %v427_v49, %v1921_v37  ;;  %v1925_v5 = vpop.eup %1924  ;;  %v515_v51 = vxor.u32 2147483648, %v514_v60  ;;  %v739_v22 = vxor.u32 2147483648, %v1923_v21  ;;  %v2559_v49 = vsub.s32 3, %v2211_v29 }
 0x105   : > { %v425_v42 = vsel %vm423_vm5, %v1919_v48, %v424_v34  ;;  %v1927_v45 = vpop.eup %1926  ;;  %v638_v48 = vsel %vm627_vm9, nan, %v637_v62  ;;  %v736_v34 = vxor.u32 2147483648, %v1925_v5 }
 0x106   : > { %v429_v50 = vsel %vm422_vm6, %v425_v42, %v428_v39  ;;  %v516_v37 = vsel %vm433_vm10, %v515_v51, %v514_v60  ;;  %v2571_v39 = vsub.s32 5, %v2211_v29  ;;  %v518_v42 = vsel %vm433_vm10, %v517_v40, %v2471_v54  ;;  %v2585_v54 = vpop.permute.xlu1 %1060 }
 0x107   : > { %v430_v13 = vsel %vm419_vm8, nan, %v429_v50  ;;  %v519_v57 = vsel %vm2549_vm11, %v2356_v63, %v516_v37  ;;  %v2578_v50 = vpop.permute.xlu0 %940  ;;  %v745_v60 = vsub.f32 0.0, %v638_v48  ;;  %3124 = vst [vmem:[#allocation8_spill] sm:$0xff] %v2585_v54  ;;  %v520_v51 = vsel %vm2549_vm11, 0, %v518_v42 }
 0x108   : > { %v743_v55 = vsub.f32 0.0, %v430_v13  ;;  %1930 = vcosq.f32 %v519_v57  ;;  %v740_v27 = vsel %vm738_vm14, %v739_v22, %v1925_v5  ;;  %v524_v10 = vadd.s32 3, %v520_v51 }
 0x109   : > { %1932 = vsinq.f32 %v519_v57 }
 0x10a   : > { %v767_v15 = vmul.f32 %v1927_v45, %v743_v55  ;;  %v2583_v45 = vsub.s32 6, %v2211_v29  ;;  %1934 = vpow2.f32 %v761_v47 }
 0x10b   : > { %1936 = vpow2.f32 %v2539_v14 }
 0x10c   : > { %v786_v36 = vrot.slane %v767_v15, %v2217_v30  ;;  %v806_v58 = vrot.slane %v767_v15, %v2220_v31  ;;  %v830_v32 = vrot.slane %v767_v15, %v2545_v18  ;;  %v854_v13 = vrot.slane %v767_v15, %v2559_v49 }
 0x10d   : > { %v878_v40 = vrot.slane %v767_v15, %v2568_v28  ;;  %v902_v48 = vrot.slane %v767_v15, %v2571_v39  ;;  %v926_v22 = vrot.slane %v767_v15, %v2583_v45 }
 0x10e   : > { %v793_v33 = vmul.f32 %v786_v36, %v2341_v2  ;;  %v813_v35 = vmul.f32 %v806_v58, %v2352_v19  ;;  %v791_v62 = vmul.f32 %v786_v36, %v2484_v43  ;;  %v811_v37 = vmul.f32 %v806_v58, %v2505_v38 }
 0x10f   : > { %v837_v57 = vmul.f32 %v830_v32, %v2523_v3  ;;  %v737_v36 = vsel %vm735_vm13, %v1923_v21, %v736_v34  ;;  %v861_v20 = vmul.f32 %v854_v13, %v2393_v46  ;;  %v859_v58 = vmul.f32 %v854_v13, %v2379_v1  ;;  %v2601_v21 = vpop.permute.xlu0 %968 }
 0x110   : > { %v817_v55 = vadd.f32 %v813_v35, %v793_v33  ;;  %v1929_v33 = vpop.eup %1928  ;;  %v835_v35 = vmul.f32 %v830_v32, %v2370_v56  ;;  %v815_v23 = vadd.f32 %v811_v37, %v791_v62  ;;  %v885_v5 = vmul.f32 %v878_v40, %v2404_v59 }
 0x111   : > { %v2598_v12 = vmul.f32 %v1929_v33, %v745_v60  ;;  %v741_v32 = vsel %vm734_vm12, %v737_v36, %v740_v27  ;;  %v950_v62 = vrot.slane %v767_v15, %v2594_v16  ;;  %v2608_v60 = vpop.permute.xlu1 %1064  ;;  %v883_v47 = vmul.f32 %v878_v40, %v2531_v0 }
 0x112   : > { %v841_v42 = vadd.f32 %v837_v57, %v817_v55  ;;  %v839_v34 = vadd.f32 %v835_v35, %v815_v23  ;;  %3125 = vst [vmem:[#allocation9_spill] sm:$0xff] %v2608_v60  ;;  %v909_v51 = vmul.f32 %v902_v48, %v2541_v24  ;;  %v525_v37 = vand.u32 3, %v524_v10 }
 0x113   : > { %v907_v27 = vmul.f32 %v902_v48, %v2423_v53  ;;  %v933_v14 = vmul.f32 %v926_v22, %v2451_v61  ;;  %v742_v36 = vsel %vm731_vm15, nan, %v741_v32  ;;  %v931_v33 = vmul.f32 %v926_v22, %v2434_v44  ;;  %v2620_v40 = vpop.permute.xlu0 %1012 }
 0x114   : > { %v865_v8 = vadd.f32 %v861_v20, %v841_v42  ;;  %v863_v55 = vadd.f32 %v859_v58, %v839_v34  ;;  %v974_v20 = vrot.slane %v2598_v12, %v2217_v30  ;;  %v957_v35 = vmul.f32 %v950_v62, %v2469_v17 }
 0x115   : > { %v1931_v57 = vpop.eup %1930  ;;  %vm527_vm0 = vcmp.eq.s32.totalorder %v525_v37, 0  ;;  %vm530_vm1 = vcmp.eq.s32.totalorder %v525_v37, 2  ;;  %v955_v32 = vmul.f32 %v950_v62, %v2578_v50  ;;  %vm526_vm2 = vcmp.lt.s32.totalorder %v525_v37, 2 }
 0x116   : > { %v889_v13 = vadd.f32 %v885_v5, %v865_v8  ;;  %v887_v52 = vadd.f32 %v883_v47, %v863_v55  ;;  %v998_v8 = vrot.slane %v2598_v12, %v2220_v31  ;;  %v1933_v41 = vpop.eup %1932  ;;  %v531_v10 = vxor.u32 2147483648, %v1931_v57  ;;  %v2624_v5 = vpop.permute.xlu1 %1088 }
 0x117   : > { %v528_v48 = vxor.u32 2147483648, %v1933_v41  ;;  %v981_v58 = vmul.f32 %v974_v20, %v2601_v21  ;;  %v1935_v6 = vpop.eup %1934  ;;  %v979_v29 = vmul.f32 %v974_v20, %v2486_v25  ;;  %v1022_v62 = vrot.slane %v2598_v12, %v2545_v18 }
 0x118   : > { %v913_v15 = vadd.f32 %v909_v51, %v889_v13  ;;  %v911_v23 = vadd.f32 %v907_v27, %v887_v52  ;;  %v532_v34 = vsel %vm530_vm1, %v531_v10, %v1933_v41  ;;  %v1046_v37 = vrot.slane %v2598_v12, %v2559_v49 }
 0x119   : > { %v529_v47 = vsel %vm527_vm0, %v1931_v57, %v528_v48  ;;  %v1937_v57 = vpop.eup %1936  ;;  %v1003_v48 = vmul.f32 %v998_v8, %v2516_v11 }
 0x11a   : > { %v937_v42 = vadd.f32 %v933_v14, %v913_v15  ;;  %v935_v22 = vadd.f32 %v931_v33, %v911_v23  ;;  %v533_v13 = vsel %vm526_vm2, %v529_v47, %v532_v34  ;;  %v746_v14 = vsub.f32 0.0, %v742_v36  ;;  %v2628_v15 = vpop.permute.xlu0 %1040  ;;  %v2636_v63 = vpop.permute.xlu1 %1108 }
 0x11b   : > { %v534_v52 = vsel %vm523_vm3, nan, %v533_v13  ;;  %v1005_v33 = vmul.f32 %v998_v8, %v2529_v26  ;;  %v1070_v23 = vrot.slane %v2598_v12, %v2568_v28 }
 0x11c   : > { %v961_v55 = vadd.f32 %v957_v35, %v937_v42  ;;  %v959_v51 = vadd.f32 %v955_v32, %v935_v22  ;;  %v744_v4 = vsub.f32 0.0, %v534_v52  ;;  %v2638_v35 = vmul.f32 %v1937_v57, %v746_v14 }
 0x11d   : > { %v1051_v22 = vmul.f32 %v1046_v37, %v2554_v7  ;;  %v1075_v14 = vmul.f32 %v1070_v23, %v2585_v54 }
 0x11e   : > { %v985_v27 = vadd.f32 %v981_v58, %v961_v55  ;;  %v768_v41 = vmul.f32 %v1935_v6, %v744_v4  ;;  %v983_v36 = vadd.f32 %v979_v29, %v959_v51  ;;  %v1029_v58 = vmul.f32 %v1022_v62, %v2534_v9  ;;  %v2651_v6 = vpop.permute.xlu0 %1084  ;;  %v2662_v52 = vpop.permute.xlu1 %1132 }
 0x11f   : > { %v1027_v29 = vmul.f32 %v1022_v62, %v2620_v40  ;;  %v1094_v4 = vrot.slane %v2598_v12, %v2571_v39  ;;  %v1077_v62 = vmul.f32 %v1070_v23, %v2608_v60 }
 0x120   : > { %v1009_v10 = vadd.f32 %v1005_v33, %v985_v27  ;;  %v790_v20 = vrot.slane %v768_v41, %v2217_v30  ;;  %v810_v42 = vrot.slane %v768_v41, %v2220_v31  ;;  %v834_v34 = vrot.slane %v768_v41, %v2545_v18 }
 0x121   : > { %v1007_v47 = vadd.f32 %v1003_v48, %v983_v36  ;;  %v858_v51 = vrot.slane %v768_v41, %v2559_v49  ;;  %v2659_v27 = vrot.slane %v2638_v35, %v2217_v30  ;;  %v1101_v23 = vmul.f32 %v1094_v4, %v2624_v5 }
 0x122   : > { %v794_v32 = vmul.f32 %v790_v20, %v2341_v2  ;;  %v814_v55 = vmul.f32 %v810_v42, %v2352_v19  ;;  %v1033_v13 = vadd.f32 %v1029_v58, %v1009_v10  ;;  %v792_v8 = vmul.f32 %v790_v20, %v2484_v43  ;;  %v2677_v54 = vpop.permute.xlu0 %1112 }
 0x123   : > { %v1053_v2 = vmul.f32 %v1046_v37, %v2628_v15  ;;  %v1118_v19 = vrot.slane %v2598_v12, %v2583_v45  ;;  %v882_v43 = vrot.slane %v768_v41, %v2568_v28  ;;  %v812_v57 = vmul.f32 %v810_v42, %v2505_v38 }
 0x124   : > { %v818_v33 = vadd.f32 %v814_v55, %v794_v32  ;;  %v838_v36 = vmul.f32 %v834_v34, %v2523_v3  ;;  %v1142_v10 = vrot.slane %v2598_v12, %v2594_v16  ;;  %v906_v20 = vrot.slane %v768_v41, %v2571_v39 }
 0x125   : > { %v1031_v48 = vadd.f32 %v1027_v29, %v1007_v47  ;;  %v1057_v58 = vadd.f32 %v1053_v2, %v1033_v13  ;;  %v836_v37 = vmul.f32 %v834_v34, %v2370_v56  ;;  %v862_v32 = vmul.f32 %v858_v51, %v2393_v46  ;;  %v2683_v2 = vpop.permute.xlu1 %1136 }
 0x126   : > { %v816_v55 = vadd.f32 %v812_v57, %v792_v8  ;;  %v842_v30 = vadd.f32 %v838_v36, %v818_v33  ;;  %v930_v38 = vrot.slane %v768_v41, %v2583_v45  ;;  %v1099_v12 = vmul.f32 %v1094_v4, %v2651_v6 }
 0x127   : > { %v1055_v3 = vadd.f32 %v1051_v22, %v1031_v48  ;;  %v1081_v42 = vadd.f32 %v1077_v62, %v1057_v58  ;;  %v860_v60 = vmul.f32 %v858_v51, %v2379_v1  ;;  %v886_v29 = vmul.f32 %v882_v43, %v2404_v59 }
 0x128   : > { %v840_v47 = vadd.f32 %v836_v37, %v816_v55  ;;  %v866_v13 = vadd.f32 %v862_v32, %v842_v30  ;;  %v954_v56 = vrot.slane %v768_v41, %v2594_v16  ;;  %v1125_v8 = vmul.f32 %v1118_v19, %v2677_v54  ;;  %v2708_v55 = vpop.permute.xlu0 %1157 }
 0x129   : > { %v1105_v46 = vadd.f32 %v1101_v23, %v1081_v42  ;;  %v1079_v34 = vadd.f32 %v1075_v14, %v1055_v3  ;;  %v884_v22 = vmul.f32 %v882_v43, %v2531_v0  ;;  %v910_v4 = vmul.f32 %v906_v20, %v2541_v24  ;;  %v2698_v37 = vpop.permute.xlu1 %1162 }
 0x12a   : > { %v864_v33 = vadd.f32 %v860_v60, %v840_v47  ;;  %v890_v62 = vadd.f32 %v886_v29, %v866_v13  ;;  %v1123_v1 = vmul.f32 %v1118_v19, %v2636_v63  ;;  %v1149_v30 = vmul.f32 %v1142_v10, %v2683_v2 }
 0x12b   : > { %v1103_v57 = vadd.f32 %v1099_v12, %v1079_v34  ;;  %v1129_v59 = vadd.f32 %v1125_v8, %v1105_v46  ;;  %v908_v51 = vmul.f32 %v906_v20, %v2423_v53  ;;  %v934_v41 = vmul.f32 %v930_v38, %v2451_v61 }
 0x12c   : > { %v888_v36 = vadd.f32 %v884_v22, %v864_v33  ;;  %v914_v14 = vadd.f32 %v910_v4, %v890_v62  ;;  %v1002_v60 = vrot.slane %v2638_v35, %v2220_v31  ;;  %v1147_v0 = vmul.f32 %v1142_v10, %v2662_v52 }
 0x12d   : > { %v1127_v48 = vadd.f32 %v1123_v1, %v1103_v57  ;;  %v1153_v43 = vadd.f32 %v1149_v30, %v1129_v59  ;;  %v932_v24 = vmul.f32 %v930_v38, %v2434_v44  ;;  %v958_v19 = vmul.f32 %v954_v56, %v2469_v17  ;;  %v3126_v57 = vld [vmem:[#allocation9_spill] sm:$0xff] }
 0x12e   : > { %v912_v58 = vadd.f32 %v908_v51, %v888_v36  ;;  %v938_v23 = vadd.f32 %v934_v41, %v914_v14  ;;  %v1026_v53 = vrot.slane %v2638_v35, %v2545_v18  ;;  %v956_v32 = vmul.f32 %v954_v56, %v2578_v50 }
 0x12f   : > { %v2703_v61 = vadd.f32 %v2698_v37, %v1153_v43  ;;  %v1151_v20 = vadd.f32 %v1147_v0, %v1127_v48  ;;  %v982_v44 = vmul.f32 %v2659_v27, %v2601_v21  ;;  %v1050_v17 = vrot.slane %v2638_v35, %v2559_v49 }
 0x130   : > { %v936_v31 = vadd.f32 %v932_v24, %v912_v58  ;;  %v962_v10 = vadd.f32 %v958_v19, %v938_v23  ;;  %v980_v3 = vmul.f32 %v2659_v27, %v2486_v25  ;;  %v1006_v42 = vmul.f32 %v1002_v60, %v2529_v26 }
 0x131   : > { %v1380_v38 = vand.u32 2139095040, %v2703_v61  ;;  %v2714_v18 = vadd.f32 %v2708_v55, %v1151_v20  ;;  %v1004_v29 = vmul.f32 %v1002_v60, %v2516_v11  ;;  %v1030_v13 = vmul.f32 %v1026_v53, %v2534_v9 }
 0x132   : > { %v960_v50 = vadd.f32 %v956_v32, %v936_v31  ;;  %v986_v12 = vadd.f32 %v982_v44, %v962_v10  ;;  %v1074_v46 = vrot.slane %v2638_v35, %v2568_v28  ;;  %v1028_v34 = vmul.f32 %v1026_v53, %v2620_v40 }
 0x133   : > { %v1381_v21 = vshrl.u32 %v1380_v38, 23  ;;  %v1172_v47 = vand.u32 2139095040, %v2714_v18  ;;  %v1054_v25 = vmul.f32 %v1050_v17, %v2628_v15  ;;  %v1098_v11 = vrot.slane %v2638_v35, %v2571_v39  ;;  %v3127_v15 = vld [vmem:[#allocation8_spill] sm:$0xff] }
 0x134   : > { %v984_v49 = vadd.f32 %v980_v3, %v960_v50  ;;  %v1010_v56 = vadd.f32 %v1006_v42, %v986_v12  ;;  %v1169_v33 = vand.u32 2147483647, %v2714_v18  ;;  %v1052_v22 = vmul.f32 %v1050_v17, %v2554_v7 }
 0x135   : > { %v1173_v27 = vshrl.u32 %v1172_v47, 23  ;;  %v1777_v9 = vadd.s32 4294967169, %v1381_v21  ;;  %v1078_v1 = vmul.f32 %v1074_v46, %v3126_v57  ;;  %v1122_v40 = vrot.slane %v2638_v35, %v2583_v45 }
 0x136   : > { %v1008_v26 = vadd.f32 %v1004_v29, %v984_v49  ;;  %v1034_v8 = vadd.f32 %v1030_v13, %v1010_v56  ;;  %v1076_v59 = vmul.f32 %v1074_v46, %v3127_v15  ;;  %v1102_v39 = vmul.f32 %v1098_v11, %v2624_v5 }
 0x137   : > { %v1769_v62 = vadd.s32 4294967169, %v1173_v27  ;;  %v1176_v36 = vand.u32 8388607, %v1169_v33  ;;  %v1100_v7 = vmul.f32 %v1098_v11, %v2651_v6  ;;  %v1146_v14 = vrot.slane %v2638_v35, %v2594_v16 }
 0x138   : > { %v1032_v4 = vadd.f32 %v1028_v34, %v1008_v26  ;;  %v1058_v28 = vadd.f32 %v1054_v25, %v1034_v8  ;;  %v1387_v60 = vadd.s32 1, %v1777_v9  ;;  %v1126_v45 = vmul.f32 %v1122_v40, %v2677_v54 }
 0x139   : > { %v1179_v30 = vadd.s32 1, %v1769_v62  ;;  %v1124_v24 = vmul.f32 %v1122_v40, %v2636_v63  ;;  %v1148_v19 = vmul.f32 %v1146_v14, %v2662_v52  ;;  %v1150_v53 = vmul.f32 %v1146_v14, %v2683_v2 }
 0x13a   : > { %v1056_v51 = vadd.f32 %v1052_v22, %v1032_v4  ;;  %v1082_v41 = vadd.f32 %v1078_v1, %v1058_v28  ;;  %v1177_v6 = vor.u32 8388608, %v1176_v36  ;;  %vm1388_vm5 = vcmp.gt.s32.totalorder %v1387_v60, 0 }
 0x13b   : > { %vm1180_vm4 = vcmp.gt.s32.totalorder %v1179_v30, 0  ;;  %v3128_v35 = vmov 683565275   ;;  %v3129_v44 = vmov 2475754826   ;;  %v1389_v8 = vsel %vm1388_vm5, %v1387_v60, 0 }
 0x13c   : > { %v1106_v48 = vadd.f32 %v1102_v39, %v1082_v41  ;;  %v1080_v0 = vadd.f32 %v1076_v59, %v1056_v51  ;;  %v1181_v43 = vsel %vm1180_vm4, %v1179_v30, 0  ;;  %v3130_v17 = vmov 2131351028  }
 0x13d   : > { %v1183_v5 = vand.u32 31, %v1181_v43  ;;  %v1182_v20 = vshrl.u32 %v1181_v43, 5  ;;  %v3131_v3 = vmov 2102212464   ;;  %v3132_v12 = vmov 920167782  }
 0x13e   : > { %v1104_v58 = vadd.f32 %v1100_v7, %v1080_v0  ;;  %v1130_v23 = vadd.f32 %v1126_v45, %v1106_v48  ;;  %v3133_v47 = vmov 1326507024   ;;  %v1217_v11 = vshll.u32 %v1177_v6, 8 }
 0x13f   : > { %v1184_v16 = vsub.s32 32, %v1183_v5  ;;  %v1186_v31 = vshll.u32 %v3128_v35, %v1183_v5  ;;  %v1189_v54 = vshll.u32 %v3129_v44, %v1183_v5  ;;  %v1192_v38 = vshll.u32 %v3130_v17, %v1183_v5 }
 0x140   : > { %v1128_v32 = vadd.f32 %v1124_v24, %v1104_v58  ;;  %v1154_v10 = vadd.f32 %v1150_v53, %v1130_v23  ;;  %v1195_v2 = vshll.u32 %v3131_v3, %v1183_v5  ;;  %v1198_v21 = vshll.u32 %v3132_v12, %v1183_v5 }
 0x141   : > { %v1187_v63 = vshrl.u32 %v3129_v44, %v1184_v16  ;;  %v1190_v52 = vshrl.u32 %v3130_v17, %v1184_v16  ;;  %v1193_v42 = vshrl.u32 %v3131_v3, %v1184_v16  ;;  %v1196_v29 = vshrl.u32 %v3132_v12, %v1184_v16 }
 0x142   : > { %v1152_v50 = vadd.f32 %v1148_v19, %v1128_v32  ;;  %v1199_v13 = vshrl.u32 %v3133_v47, %v1184_v16  ;;  %v2758_v26 = vadd.f32 %v2698_v37, %v1154_v10  ;;  %vm1201_vm6 = vcmp.lt.s32.totalorder %v1182_v20, 1 }
 0x143   : > { %v1188_v49 = vor.u32 %v1187_v63, %v1186_v31  ;;  %v1191_v56 = vor.u32 %v1190_v52, %v1189_v54  ;;  %v1194_v46 = vor.u32 %v1193_v42, %v1192_v38  ;;  %v1197_v25 = vor.u32 %v1196_v29, %v1195_v2 }
 0x144   : > { %v2755_v34 = vadd.f32 %v2708_v55, %v1152_v50  ;;  %v1200_v27 = vor.u32 %v1199_v13, %v1198_v21  ;;  %vm1203_vm7 = vcmp.lt.s32.totalorder %v1182_v20, 3  ;;  %vm1204_vm8 = vcmp.lt.s32.totalorder %v1182_v20, 4 }
 0x145   : > { %v1209_v9 = vsel %vm1201_vm6, %v1188_v49, %v1191_v56  ;;  %v1206_v62 = vsel %vm1204_vm8, %v1194_v46, 2102212464  ;;  %v1210_v4 = vsel %vm1204_vm8, %v1197_v25, 920167782  ;;  %v1213_v55 = vsel %vm1201_vm6, %v1191_v56, %v1194_v46 }
 0x146   : > { %v1276_v22 = vand.u32 2139095040, %v2755_v34  ;;  %v1214_v57 = vsel %vm1204_vm8, %v1200_v27, 1326507024  ;;  %v1185_v28 = vshrl.u32 %v3128_v35, %v1184_v16  ;;  %vm1202_vm9 = vcmp.lt.s32.totalorder %v1182_v20, 2 }
 0x147   : > { %v1211_v37 = vsel %vm1203_vm7, %v1194_v46, %v1210_v4  ;;  %v2766_v40 = vand.u32 31, %v1389_v8  ;;  %v1484_v15 = vand.u32 2139095040, %v2758_v26  ;;  %v1215_v30 = vsel %vm1203_vm7, %v1197_v25, %v1214_v57 }
 0x148   : > { %v1277_v1 = vshrl.u32 %v1276_v22, 23  ;;  %v1212_v59 = vsel %vm1202_vm9, %v1209_v9, %v1211_v37  ;;  %v1205_v41 = vsel %vm1201_vm6, %v1185_v28, %v1188_v49  ;;  %v1207_v39 = vsel %vm1203_vm7, %v1191_v56, %v1206_v62 }
 0x149   : > { %v1216_v36 = vsel %vm1202_vm9, %v1213_v55, %v1215_v30  ;;  %v2775_v60 = vmul.u32.u64.low %v1217_v11, %v1212_v59  ;;  %v2776_v48 = vmul.u32.u64.high %v1217_v11, %v1212_v59, %v2775_v60  ;;  %v1377_v45 = vand.u32 2147483647, %v2703_v61 }
 0x14a   : > { %v1773_v51 = vadd.s32 4294967169, %v1277_v1  ;;  %v2772_v7 = vmul.u32.u64.low %v1217_v11, %v1216_v36  ;;  %v2773_v14 = vmul.u32.u64.high %v1217_v11, %v1216_v36, %v2772_v7  ;;  %v1485_v43 = vshrl.u32 %v1484_v15, 23 }
 0x14b   : > { %v1208_v24 = vsel %vm1202_vm9, %v1205_v41, %v1207_v39  ;;  %v2781_v19 = vsub.s32 32, %v2766_v40  ;;  %v1273_v5 = vand.u32 2147483647, %v2755_v34  ;;  %v1227_v23 = vadd.s32 1, %v2776_v48 }
 0x14c   : > { %v1283_v0 = vadd.s32 1, %v1773_v51  ;;  %vm1226_vm11 = vc.u32 %v2773_v14, %v2775_v60  ;;  %v1224_v6 = vmul.u32 %v1217_v11, %v1208_v24  ;;  %v2789_v20 = vand.u32 8388607, %v1377_v45 }
 0x14d   : > { %v2791_v16 = vshrl.u32 %v1389_v8, 5  ;;  %v1781_v31 = vadd.s32 4294967169, %v1485_v43  ;;  %v1228_v32 = vsel %vm1226_vm11, %v1227_v23, %v2776_v48  ;;  %v1394_v10 = vshll.u32 %v3128_v35, %v2766_v40 }
 0x14e   : > { %vm1284_vm10 = vcmp.gt.s32.totalorder %v1283_v0, 0  ;;  %v1229_v38 = vadd.s32 %v1228_v32, %v1224_v6  ;;  %v1280_v63 = vand.u32 8388607, %v1273_v5  ;;  %v1395_v52 = vshrl.u32 %v3129_v44, %v2781_v19 }
 0x14f   : > { %v1285_v58 = vsel %vm1284_vm10, %v1283_v0, 0  ;;  %v1398_v0 = vshrl.u32 %v3130_v17, %v2781_v19  ;;  %vm1409_vm2 = vcmp.lt.s32.totalorder %v2791_v16, 1  ;;  %vm1412_vm3 = vcmp.lt.s32.totalorder %v2791_v16, 4 }
 0x150   : > { %v1287_v53 = vand.u32 31, %v1285_v58  ;;  %v1286_v42 = vshrl.u32 %v1285_v58, 5  ;;  %v1230_v21 = vadd.s32 536870912, %v1229_v38  ;;  %v1281_v22 = vor.u32 8388608, %v1280_v63 }
 0x151   : > { %v1397_v63 = vshll.u32 %v3129_v44, %v2766_v40  ;;  %vm1411_vm5 = vcmp.lt.s32.totalorder %v2791_v16, 3  ;;  %vm1410_vm6 = vcmp.lt.s32.totalorder %v2791_v16, 2 }
 0x152   : > { %v1288_v54 = vsub.s32 32, %v1287_v53  ;;  %v1290_v2 = vshll.u32 %v3128_v35, %v1287_v53  ;;  %v1293_v50 = vshll.u32 %v3129_v44, %v1287_v53  ;;  %v1296_v29 = vshll.u32 %v3130_v17, %v1287_v53 }
 0x153   : > { %v1299_v56 = vshll.u32 %v3131_v3, %v1287_v53  ;;  %v1302_v27 = vshll.u32 %v3132_v12, %v1287_v53  ;;  %v2810_v11 = vshrl.u32 %v1230_v21, 30  ;;  %vm1305_vm12 = vcmp.lt.s32.totalorder %v1286_v42, 1 }
 0x154   : > { %v1291_v13 = vshrl.u32 %v3129_v44, %v1288_v54  ;;  %v1294_v49 = vshrl.u32 %v3130_v17, %v1288_v54  ;;  %v1297_v46 = vshrl.u32 %v3131_v3, %v1288_v54  ;;  %v1300_v25 = vshrl.u32 %v3132_v12, %v1288_v54 }
 0x155   : > { %v1303_v8 = vshrl.u32 %v3133_v47, %v1288_v54  ;;  %v1232_v1 = vshll.u32 %v2810_v11, 30  ;;  %vm1307_vm13 = vcmp.lt.s32.totalorder %v1286_v42, 3  ;;  %vm1308_vm14 = vcmp.lt.s32.totalorder %v1286_v42, 4 }
 0x156   : > { %v1292_v9 = vor.u32 %v1291_v13, %v1290_v2  ;;  %v1295_v62 = vor.u32 %v1294_v49, %v1293_v50  ;;  %v1298_v4 = vor.u32 %v1297_v46, %v1296_v29  ;;  %v1301_v55 = vor.u32 %v1300_v25, %v1299_v56 }
 0x157   : > { %v1304_v57 = vor.u32 %v1303_v8, %v1302_v27  ;;  %v2815_v51 = vsub.s32 %v1229_v38, %v1232_v1  ;;  %v1289_v41 = vshrl.u32 %v3128_v35, %v1288_v54  ;;  %vm1306_vm15 = vcmp.lt.s32.totalorder %v1286_v42, 2 }
 0x158   : > { %v1313_v28 = vsel %vm1305_vm12, %v1292_v9, %v1295_v62  ;;  %v1310_v37 = vsel %vm1308_vm14, %v1298_v4, 2102212464  ;;  %v1314_v15 = vsel %vm1308_vm14, %v1301_v55, 920167782  ;;  %v1317_v59 = vsel %vm1305_vm12, %v1295_v62, %v1298_v4 }
 0x159   : > { %v1318_v30 = vsel %vm1308_vm14, %v1304_v57, 1326507024  ;;  %v1315_v39 = vsel %vm1307_vm13, %v1298_v4, %v1314_v15  ;;  %v1321_v48 = vshll.u32 %v1281_v22, 8  ;;  %v1235_v43 = vsub.s32 0, %v2815_v51 }
 0x15a   : > { %v1316_v36 = vsel %vm1306_vm15, %v1313_v28, %v1315_v39  ;;  %v1319_v7 = vsel %vm1307_vm13, %v1301_v55, %v1318_v30  ;;  %v1309_v24 = vsel %vm1305_vm12, %v1289_v41, %v1292_v9  ;;  %v1311_v58 = vsel %vm1307_vm13, %v1295_v62, %v1310_v37 }
 0x15b   : > { %v1320_v23 = vsel %vm1306_vm15, %v1317_v59, %v1319_v7  ;;  %v2830_v32 = vmul.u32.u64.low %v1321_v48, %v1316_v36  ;;  %v2831_v54 = vmul.u32.u64.high %v1321_v48, %v1316_v36, %v2830_v32  ;;  %v1770_v38 = vmin.u32 %v1235_v43, %v2815_v51 }
 0x15c   : > { %v2827_v53 = vmul.u32.u64.low %v1321_v48, %v1320_v23  ;;  %v2828_v6 = vmul.u32.u64.high %v1321_v48, %v1320_v23, %v2827_v53  ;;  %v1400_v2 = vshll.u32 %v3130_v17, %v2766_v40  ;;  %v1401_v50 = vshrl.u32 %v3131_v3, %v2781_v19 }
 0x15d   : > { %v1312_v29 = vsel %vm1306_vm15, %v1309_v24, %v1311_v58  ;;  %v1403_v21 = vshll.u32 %v3131_v3, %v2766_v40  ;;  %v1404_v13 = vshrl.u32 %v3132_v12, %v2781_v19  ;;  %v1407_v49 = vshrl.u32 %v3133_v47, %v2781_v19 }
 0x15e   : > { %v1491_v56 = vadd.s32 1, %v1781_v31  ;;  %v1237_v46 = vclz %v1770_v38  ;;  %v1396_v25 = vor.u32 %v1395_v52, %v1394_v10  ;;  %v1399_v27 = vor.u32 %v1398_v0, %v1397_v63 }
 0x15f   : > { %vm1330_vm0 = vc.u32 %v2828_v6, %v2830_v32  ;;  %v1331_v8 = vadd.s32 1, %v2831_v54  ;;  %v1405_v42 = vor.u32 %v1404_v13, %v1403_v21  ;;  %v1406_v22 = vshll.u32 %v3132_v12, %v2766_v40 }
 0x160   : > { %v1771_v9 = vadd.s32 4294967294, %v1237_v46  ;;  %v1328_v62 = vmul.u32 %v1321_v48, %v1312_v29  ;;  %v1385_v4 = vor.u32 8388608, %v2789_v20  ;;  %v1402_v57 = vor.u32 %v1401_v50, %v1400_v2 }
 0x161   : > { %v1332_v55 = vsel %vm1330_vm0, %v1331_v8, %v2831_v54  ;;  %v1408_v31 = vor.u32 %v1407_v49, %v1406_v22  ;;  %vm1492_vm1 = vcmp.gt.s32.totalorder %v1491_v56, 0  ;;  %v1417_v52 = vsel %vm1409_vm2, %v1396_v25, %v1399_v27 }
 0x162   : > { %v1333_v10 = vadd.s32 %v1332_v55, %v1328_v62  ;;  %vm1772_vm4 = vcmp.lt.s32.totalorder %v1771_v9, 0  ;;  %v1418_v1 = vsel %vm1412_vm3, %v1405_v42, 920167782  ;;  %v1425_v28 = vshll.u32 %v1385_v4, 8 }
 0x163   : > { %v1493_v20 = vsel %vm1492_vm1, %v1491_v56, 0  ;;  %v1419_v37 = vsel %vm1411_vm5, %v1402_v57, %v1418_v1  ;;  %v1422_v15 = vsel %vm1412_vm3, %v1408_v31, 1326507024  ;;  %v1240_v59 = vsel %vm1772_vm4, 0, %v1771_v9 }
 0x164   : > { %v1334_v40 = vadd.s32 536870912, %v1333_v10  ;;  %v1420_v41 = vsel %vm1410_vm6, %v1417_v52, %v1419_v37  ;;  %v1421_v39 = vsel %vm1409_vm2, %v1399_v27, %v1402_v57  ;;  %v1414_v36 = vsel %vm1412_vm3, %v1402_v57, 2102212464 }
 0x165   : > { %v1423_v7 = vsel %vm1411_vm5, %v1405_v42, %v1422_v15  ;;  %v2871_v48 = vmul.u32.u64.low %v1425_v28, %v1420_v41  ;;  %v2872_v0 = vmul.u32.u64.high %v1425_v28, %v1420_v41, %v2871_v48  ;;  %v1393_v24 = vshrl.u32 %v3128_v35, %v2781_v19 }
 0x166   : > { %v2863_v30 = vshrl.u32 %v1334_v40, 30  ;;  %v1245_v58 = vsub.s32 4294967266, %v1240_v59  ;;  %v1424_v23 = vsel %vm1410_vm6, %v1421_v39, %v1423_v7  ;;  %v1495_v53 = vand.u32 31, %v1493_v20 }
 0x167   : > { %v1413_v38 = vsel %vm1409_vm2, %v1393_v24, %v1396_v25  ;;  %v1415_v63 = vsel %vm1411_vm5, %v1399_v27, %v1414_v36  ;;  %v2886_v2 = vmul.u32.u64.low %v1425_v28, %v1424_v23  ;;  %v2887_v50 = vmul.u32.u64.high %v1425_v28, %v1424_v23, %v2886_v2 }
 0x168   : > { %v1336_v43 = vshll.u32 %v2863_v30, 30  ;;  %v1246_v21 = vadd.s32 127, %v1245_v58  ;;  %v1416_v19 = vsel %vm1410_vm6, %v1413_v38, %v1415_v63  ;;  %v1435_v13 = vadd.s32 1, %v2872_v0 }
 0x169   : > { %v1496_v49 = vsub.s32 32, %v1495_v53  ;;  %v1241_v46 = vsub.s32 32, %v1240_v59  ;;  %vm1434_vm7 = vc.u32 %v2887_v50, %v2871_v48  ;;  %v2896_v25 = vshrl.u32 %v1493_v20, 5 }
 0x16a   : > { %v2880_v54 = vsub.s32 %v1333_v10, %v1336_v43  ;;  %v1432_v8 = vmul.u32 %v1425_v28, %v1416_v19  ;;  %v1481_v42 = vand.u32 2147483647, %v2758_v26  ;;  %v1225_v22 = vadd.s32 %v2775_v60, %v2773_v14 }
 0x16b   : > { %v1242_v16 = vshll.u32 %v2815_v51, %v1240_v59  ;;  %v1247_v9 = vshll.u32 %v1246_v21, 23  ;;  %v1436_v62 = vsel %vm1434_vm7, %v1435_v13, %v2872_v0  ;;  %v1499_v57 = vshrl.u32 %v3129_v44, %v1496_v49 }
 0x16c   : > { %v1339_v29 = vsub.s32 0, %v2880_v54  ;;  %v1437_v55 = vadd.s32 %v1436_v62, %v1432_v8  ;;  %v1502_v31 = vshrl.u32 %v3130_v17, %v1496_v49  ;;  %v1243_v10 = vshrl.u32 %v1225_v22, %v1241_v46 }
 0x16d   : > { %v1505_v52 = vshrl.u32 %v3131_v3, %v1496_v49  ;;  %v1507_v1 = vshll.u32 %v3131_v3, %v1495_v53  ;;  %v1508_v40 = vshrl.u32 %v3132_v12, %v1496_v49  ;;  %v1488_v14 = vand.u32 8388607, %v1481_v42 }
 0x16e   : > { %v1774_v56 = vmin.u32 %v1339_v29, %v2880_v54  ;;  %v1438_v28 = vadd.s32 536870912, %v1437_v55  ;;  %v1498_v60 = vshll.u32 %v3128_v35, %v1495_v53  ;;  %v1501_v51 = vshll.u32 %v3129_v44, %v1495_v53 }
 0x16f   : > { %v1504_v20 = vshll.u32 %v3130_v17, %v1495_v53  ;;  %v1509_v37 = vor.u32 %v1508_v40, %v1507_v1  ;;  %v1511_v15 = vshrl.u32 %v3133_v47, %v1496_v49  ;;  %v1248_v59 = vor.u32 4788187, %v1247_v9 }
 0x170   : > { %v1341_v27 = vclz %v1774_v56  ;;  %v2914_v41 = vshrl.u32 %v1438_v28, 30  ;;  %v1500_v3 = vor.u32 %v1499_v57, %v1498_v60  ;;  %v1503_v39 = vor.u32 %v1502_v31, %v1501_v51 }
 0x171   : > { %v1506_v36 = vor.u32 %v1505_v52, %v1504_v20  ;;  %v1510_v7 = vshll.u32 %v3132_v12, %v1495_v53  ;;  %v1244_v0 = vor.u32 %v1243_v10, %v1242_v16  ;;  %vm1516_vm9 = vcmp.lt.s32.totalorder %v2896_v25, 4 }
 0x172   : > { %v1775_v4 = vadd.s32 4294967294, %v1341_v27  ;;  %v1440_v24 = vshll.u32 %v2914_v41, 30  ;;  %v1489_v44 = vor.u32 8388608, %v1488_v14  ;;  %vm1513_vm10 = vcmp.lt.s32.totalorder %v2896_v25, 1 }
 0x173   : > { %v1512_v58 = vor.u32 %v1511_v15, %v1510_v7  ;;  %v1522_v17 = vsel %vm1516_vm9, %v1509_v37, 920167782  ;;  %v1249_v47 = vand.u32 2147483647, %v1248_v59  ;;  %vm1515_vm11 = vcmp.lt.s32.totalorder %v2896_v25, 3 }
 0x174   : > { %vm1776_vm8 = vcmp.lt.s32.totalorder %v1775_v4, 0  ;;  %v1441_v23 = vsub.s32 %v1437_v55, %v1440_v24  ;;  %v1521_v12 = vsel %vm1513_vm10, %v1500_v3, %v1503_v39  ;;  %v1523_v38 = vsel %vm1515_vm11, %v1506_v36, %v1522_v17 }
 0x175   : > { %v1344_v43 = vsel %vm1776_vm8, 0, %v1775_v4  ;;  %v1251_v63 = vcvt.s32.f32 %v1244_v0  ;;  %vm1514_vm12 = vcmp.lt.s32.totalorder %v2896_v25, 2  ;;  %v1525_v29 = vsel %vm1513_vm10, %v1503_v39, %v1506_v36 }
 0x176   : > { %v1349_v53 = vsub.s32 4294967266, %v1344_v43  ;;  %v1443_v2 = vsub.s32 0, %v1441_v23  ;;  %v1497_v21 = vshrl.u32 %v3128_v35, %v1496_v49  ;;  %v1524_v19 = vsel %vm1514_vm12, %v1521_v12, %v1523_v38 }
 0x177   : > { %v1526_v13 = vsel %vm1516_vm9, %v1512_v58, 1326507024  ;;  %v1529_v56 = vshll.u32 %v1489_v44, 8  ;;  %v1252_v46 = vmul.f32 %v1251_v63, %v1249_v47  ;;  %v1518_v8 = vsel %vm1516_vm9, %v1506_v36, 2102212464 }
 0x178   : > { %v1778_v27 = vmin.u32 %v1443_v2, %v1441_v23  ;;  %v1527_v22 = vsel %vm1515_vm11, %v1509_v37, %v1526_v13  ;;  %v1350_v16 = vadd.s32 127, %v1349_v53  ;;  %v1345_v62 = vsub.s32 32, %v1344_v43 }
 0x179   : > { %v1528_v9 = vsel %vm1514_vm12, %v1525_v29, %v1527_v22  ;;  %v2941_v35 = vmul.u32.u64.low %v1529_v56, %v1524_v19  ;;  %v2942_v49 = vmul.u32.u64.high %v1529_v56, %v1524_v19, %v2941_v35  ;;  %v1517_v55 = vsel %vm1513_vm10, %v1497_v21, %v1500_v3 }
 0x17a   : > { %v1445_v4 = vclz %v1778_v27  ;;  %v1519_v57 = vsel %vm1515_vm11, %v1503_v39, %v1518_v8  ;;  %v2949_v31 = vmul.u32.u64.low %v1529_v56, %v1528_v9  ;;  %v2950_v10 = vmul.u32.u64.high %v1529_v56, %v1528_v9, %v2949_v31 }
 0x17b   : > { %v1253_v52 = vxor.u32 2147483648, %v1252_v46  ;;  %v1329_v40 = vadd.s32 %v2830_v32, %v2828_v6  ;;  %v1351_v28 = vshll.u32 %v1350_v16, 23  ;;  %v1520_v14 = vsel %vm1514_vm12, %v1517_v55, %v1519_v57 }
 0x17c   : > { %v1779_v1 = vadd.s32 4294967294, %v1445_v4  ;;  %v1539_v60 = vadd.s32 1, %v2942_v49  ;;  %vm1171_vm14 = vcmp.lt.s32.totalorder %v2714_v18, 0  ;;  %v1346_v15 = vshll.u32 %v2880_v54, %v1344_v43 }
 0x17d   : > { %v1347_v51 = vshrl.u32 %v1329_v40, %v1345_v62  ;;  %v1254_v37 = vsel %vm1171_vm14, %v1253_v52, %v1252_v46  ;;  %v1433_v59 = vadd.s32 %v2871_v48, %v2887_v50  ;;  %v1352_v32 = vor.u32 4788187, %v1351_v28 }
 0x17e   : > { %vm1780_vm13 = vcmp.lt.s32.totalorder %v1779_v1, 0  ;;  %v1536_v39 = vmul.u32 %v1529_v56, %v1520_v14  ;;  %vm1538_vm15 = vc.u32 %v2950_v10, %v2941_v35  ;;  %vm2967_vm0 = vcmp.le.f32.partialorder %v1169_v33, 0.7853982 }
 0x17f   : > { %v1448_v20 = vsel %vm1780_vm13, 0, %v1779_v1  ;;  %v1540_v7 = vsel %vm1538_vm15, %v1539_v60, %v2942_v49  ;;  %v1348_v54 = vor.u32 %v1347_v51, %v1346_v15  ;;  %v1257_v50 = vsel %vm2967_vm0, %v2714_v18, %v1254_v37 }
 0x180   : > { %v1449_v6 = vsub.s32 32, %v1448_v20  ;;  %v1453_v3 = vsub.s32 4294967266, %v1448_v20  ;;  %v1450_v0 = vshll.u32 %v1441_v23, %v1448_v20  ;;  %v1541_v48 = vadd.s32 %v1540_v7, %v1536_v39 }
 0x181   : > { %v1353_v24 = vand.u32 2147483647, %v1352_v32  ;;  %1938 = vcosq.f32 %v1257_v50  ;;  %v1355_v33 = vcvt.s32.f32 %v1348_v54  ;;  %v1255_v53 = vsub.s32 4, %v2810_v11 }
 0x182   : > { %v1451_v36 = vshrl.u32 %v1433_v59, %v1449_v6  ;;  %v1454_v43 = vadd.s32 127, %v1453_v3  ;;  %v1542_v17 = vadd.s32 536870912, %v1541_v48  ;;  %1940 = vsinq.f32 %v1257_v50 }
 0x183   : > { %v1591_v23 = vsub.f32 0.0, %v2703_v61  ;;  %v1356_v38 = vmul.f32 %v1355_v33, %v1353_v24  ;;  %v1589_v21 = vsub.f32 0.0, %v2714_v18  ;;  %v1256_v56 = vsel %vm1171_vm14, %v1255_v53, %v2810_v11 }
 0x184   : > { %v1452_v44 = vor.u32 %v1451_v36, %v1450_v0  ;;  %v1455_v58 = vshll.u32 %v1454_v43, 23  ;;  %v2975_v12 = vshrl.u32 %v1542_v17, 30  ;;  %vm1379_vm1 = vcmp.lt.s32.totalorder %v2703_v61, 0 }
 0x185   : > { %v1357_v46 = vxor.u32 2147483648, %v1356_v38  ;;  %v1595_v22 = vmul.f32 %v1591_v23, %v2703_v61  ;;  %v1463_v16 = vsub.s32 4, %v2914_v41  ;;  %v1593_v9 = vmul.f32 %v1589_v21, %v2714_v18 }
 0x186   : > { %v1456_v47 = vor.u32 4788187, %v1455_v58  ;;  %v1459_v2 = vcvt.s32.f32 %v1452_v44  ;;  %v1544_v29 = vshll.u32 %v2975_v12, 30  ;;  %v1258_v49 = vsel %vm2967_vm0, 0, %v1256_v56 }
 0x187   : > { %vm2992_vm2 = vcmp.le.f32.partialorder %v1377_v45, 0.7853982  ;;  %vm1275_vm3 = vcmp.lt.s32.totalorder %v2755_v34, 0  ;;  %v1599_v52 = vmul.f32 0.5, %v1595_v22  ;;  %v1262_v1 = vadd.s32 3, %v1258_v49 }
 0x188   : > { %v1457_v63 = vand.u32 2147483647, %v1456_v47  ;;  %v1545_v13 = vsub.s32 %v1541_v48, %v1544_v29  ;;  %v1358_v57 = vsel %vm1275_vm3, %v1357_v46, %v1356_v38  ;;  %v1464_v45 = vsel %vm1379_vm1, %v1463_v16, %v2914_v41 }
 0x189   : > { %v1597_v40 = vmul.f32 0.5, %v1593_v9  ;;  %vm3005_vm4 = vcmp.le.f32.partialorder %v1273_v5, 0.7853982  ;;  %v1466_v37 = vsel %vm2992_vm2, 0, %v1464_v45  ;;  %v1605_v41 = vmul.f32 1.442695, %v1599_v52 }
 0x18a   : > { %v1460_v19 = vmul.f32 %v1459_v2, %v1457_v63  ;;  %v1547_v8 = vsub.s32 0, %v1545_v13  ;;  %v1361_v51 = vsel %vm3005_vm4, %v2755_v34, %v1358_v57  ;;  %v1263_v15 = vand.u32 3, %v1262_v1 }
 0x18b   : > { %v1359_v59 = vsub.s32 4, %v2863_v30  ;;  %v1601_v5 = vmul.f32 1.442695, %v1597_v40  ;;  %v1537_v32 = vadd.s32 %v2941_v35, %v2950_v10  ;;  %v1470_v7 = vadd.s32 3, %v1466_v37 }
 0x18c   : > { %v1461_v27 = vxor.u32 2147483648, %v1460_v19  ;;  %v1782_v4 = vmin.u32 %v1547_v8, %v1545_v13  ;;  %vm1265_vm6 = vcmp.eq.s32.totalorder %v1263_v15, 0  ;;  %vm1268_vm7 = vcmp.eq.s32.totalorder %v1263_v15, 2 }
 0x18d   : > { %v1590_v48 = vsub.f32 0.0, %v2755_v34  ;;  %v1360_v50 = vsel %vm1275_vm3, %v1359_v59, %v2863_v30  ;;  %v1471_v58 = vand.u32 3, %v1470_v7  ;;  %vm1264_vm8 = vcmp.lt.s32.totalorder %v1263_v15, 2  ;;  %v1616_v15 = vpop.permute.xlu1 %1615  ;;  %v1621_v59 = vpop.permute.xlu0 %1620 }
 0x18e   : > { %v1462_v11 = vsel %vm1379_vm1, %v1461_v27, %v1460_v19  ;;  %v1549_v31 = vclz %v1782_v4  ;;  %v1939_v60 = vpop.eup %1938  ;;  %v1362_v47 = vsel %vm3005_vm4, 0, %v1360_v50  ;;  %v1592_v53 = vsub.f32 0.0, %v2758_v26 }
 0x18f   : > { %v1465_v55 = vsel %vm2992_vm2, %v2703_v61, %v1462_v11  ;;  %v1941_v20 = vpop.eup %1940  ;;  %v1269_v36 = vxor.u32 2147483648, %v1939_v60  ;;  %v1594_v23 = vmul.f32 %v1590_v48, %v2755_v34  ;;  %vm1469_vm9 = vweird.f32 %v2703_v61 }
 0x190   : > { %1942 = vcosq.f32 %v1465_v55  ;;  %v1783_v14 = vadd.s32 4294967294, %v1549_v31  ;;  %v1266_v25 = vxor.u32 2147483648, %v1941_v20  ;;  %vm1476_vm10 = vcmp.eq.s32.totalorder %v1471_v58, 2 }
 0x191   : > { %1944 = vsinq.f32 %v1465_v55  ;;  %v1270_v44 = vsel %vm1268_vm7, %v1269_v36, %v1941_v20  ;;  %vm1261_vm11 = vweird.f32 %v2714_v18  ;;  %vm1473_vm12 = vcmp.eq.s32.totalorder %v1471_v58, 0 }
 0x192   : > { %vm1784_vm5 = vcmp.lt.s32.totalorder %v1783_v14, 0  ;;  %1946 = vcosq.f32 %v1361_v51  ;;  %v1267_v10 = vsel %vm1265_vm6, %v1939_v60, %v1266_v25  ;;  %v1366_v46 = vadd.s32 3, %v1362_v47 }
 0x193   : > { %v1552_v6 = vsel %vm1784_vm5, 0, %v1783_v14  ;;  %1948 = vsinq.f32 %v1361_v51  ;;  %v1271_v63 = vsel %vm1264_vm8, %v1267_v10, %v1270_v44  ;;  %vm1472_vm13 = vcmp.lt.s32.totalorder %v1471_v58, 2 }
 0x194   : > { %v1553_v3 = vsub.s32 32, %v1552_v6  ;;  %v1557_v39 = vsub.s32 4294967266, %v1552_v6  ;;  %v1554_v54 = vshll.u32 %v1545_v13, %v1552_v6  ;;  %1950 = vpow2.f32 %v1601_v5 }
 0x195   : > { %1952 = vpow2.f32 %v1605_v41  ;;  %v1272_v56 = vsel %vm1261_vm11, nan, %v1271_v63  ;;  %v1596_v16 = vmul.f32 %v1592_v53, %v2758_v26  ;;  %v1598_v9 = vmul.f32 0.5, %v1594_v23 }
 0x196   : > { %v1555_v0 = vshrl.u32 %v1537_v32, %v1553_v3  ;;  %v1558_v43 = vadd.s32 127, %v1557_v39  ;;  %vm1483_vm14 = vcmp.lt.s32.totalorder %v2758_v26, 0  ;;  %v1567_v18 = vsub.s32 4, %v2975_v12 }
 0x197   : > { %vm3034_vm15 = vcmp.le.f32.partialorder %v1481_v42, 0.7853982  ;;  %v1585_v57 = vsub.f32 0.0, %v1272_v56  ;;  %v1367_v52 = vand.u32 3, %v1366_v46  ;;  %v1600_v45 = vmul.f32 0.5, %v1596_v16  ;;  %v3142_v16 = vld [vmem:[#allocation7_spill] sm:$0xff] }
 0x198   : > { %v1556_v24 = vor.u32 %v1555_v0, %v1554_v54  ;;  %v1559_v35 = vshll.u32 %v1558_v43, 23  ;;  %v1603_v40 = vmul.f32 1.442695, %v1598_v9  ;;  %v1568_v60 = vsel %vm1483_vm14, %v1567_v18, %v2975_v12 }
 0x199   : > { %vm1369_vm0 = vcmp.eq.s32.totalorder %v1367_v52, 0  ;;  %vm1372_vm1 = vcmp.eq.s32.totalorder %v1367_v52, 2  ;;  %v1570_v37 = vsel %vm3034_vm15, 0, %v1568_v60  ;;  %v1607_v41 = vmul.f32 1.442695, %v1600_v45 }
 0x19a   : > { %v1560_v17 = vor.u32 4788187, %v1559_v35  ;;  %v1563_v29 = vcvt.s32.f32 %v1556_v24  ;;  %vm1368_vm2 = vcmp.lt.s32.totalorder %v1367_v52, 2  ;;  %v1574_v39 = vadd.s32 3, %v1570_v37 }
 0x19b   : > { %vm1365_vm3 = vweird.f32 %v2755_v34  ;;  %vm1573_vm7 = vweird.f32 %v2758_v26  ;;  %v2046_v46 = vmov 1966171168  }
 0x19c   : > { %v1561_v30 = vand.u32 2147483647, %v1560_v17  ;;  %v1575_v7 = vand.u32 3, %v1574_v39 }
 0x19d   : > { %v1943_v33 = vpop.eup %1942 }
 0x19e   : > { %v1945_v38 = vpop.eup %1944  ;;  %v1477_v2 = vxor.u32 2147483648, %v1943_v33  ;;  %v1564_v13 = vmul.f32 %v1563_v29, %v1561_v30  ;;  %vm1580_vm4 = vcmp.eq.s32.totalorder %v1575_v7, 2  ;;  %vm1577_vm5 = vcmp.eq.s32.totalorder %v1575_v7, 0 }
 0x19f   : > { %v1474_v21 = vxor.u32 2147483648, %v1945_v38  ;;  %v1947_v49 = vpop.eup %1946  ;;  %vm1576_vm6 = vcmp.lt.s32.totalorder %v1575_v7, 2 }
 0x1a0   : > { %v1478_v19 = vsel %vm1476_vm10, %v1477_v2, %v1945_v38  ;;  %v1565_v22 = vxor.u32 2147483648, %v1564_v13  ;;  %v1949_v11 = vpop.eup %1948  ;;  %v1373_v42 = vxor.u32 2147483648, %v1947_v49 }
 0x1a1   : > { %v1475_v27 = vsel %vm1473_vm12, %v1943_v33, %v1474_v21  ;;  %v1951_v1 = vpop.eup %1950  ;;  %v1370_v14 = vxor.u32 2147483648, %v1949_v11 }
 0x1a2   : > { %v1479_v8 = vsel %vm1472_vm13, %v1475_v27, %v1478_v19  ;;  %v1566_v55 = vsel %vm1483_vm14, %v1565_v22, %v1564_v13  ;;  %v1953_v28 = vpop.eup %1952  ;;  %v1609_v51 = vmul.f32 %v1951_v1, %v1585_v57  ;;  %v1374_v5 = vsel %vm1372_vm1, %v1373_v42, %v1949_v11  ;;  %v1645_v27 = vpop.permute.xlu1 %1644 }
 0x1a3   : > { %v1480_v62 = vsel %vm1469_vm9, nan, %v1479_v8  ;;  %v1569_v61 = vsel %vm3034_vm15, %v2758_v26, %v1566_v55  ;;  %v1371_v6 = vsel %vm1369_vm0, %v1947_v49, %v1370_v14  ;;  %v1657_v26 = vunpack.c.l.s4 %v2046_v46  ;;  %v3143_v55 = vld [vmem:[#allocation6_spill] sm:$0xff] }
 0x1a4   : > { %v1587_v31 = vsub.f32 0.0, %v1480_v62  ;;  %1954 = vcosq.f32 %v1569_v61  ;;  %v1623_v32 = vmul.f32 %v1616_v15, %v1609_v51  ;;  %v1375_v25 = vsel %vm1368_vm2, %v1371_v6, %v1374_v5 }
 0x1a5   : > { %1956 = vsinq.f32 %v1569_v61  ;;  %v1376_v36 = vsel %vm1365_vm3, nan, %v1375_v25  ;;  %v1650_v9 = vrot.slane %v1645_v27, %v3142_v16  ;;  %v1658_v62 = vunpack.c.0.s8 %v1657_v26 }
 0x1a6   : > { %v1611_v20 = vmul.f32 %v1953_v28, %v1587_v31  ;;  %1958 = vpow2.f32 %v1603_v40  ;;  %v1586_v48 = vsub.f32 0.0, %v1376_v36  ;;  %v3144_v61 = vlaneseq }
 0x1a7   : > { %1960 = vpow2.f32 %v1607_v41  ;;  %v1661_v57 = vsub.s32 %v1658_v62, %v3143_v55 }
 0x1a8   : > { %v1625_v3 = vmul.f32 %v1621_v59, %v1611_v20  ;;  %vm1673_vm8 = vcmp.lt.s32.totalorder %v3144_v61, 256 }
 0x1aa   : > { %v1627_v12 = vadd.f32 %v1625_v3, %v1623_v32 }
 0x1ac   : > { %v1628_v50 = vrot.slane %v1627_v12, 4 }
 0x1ae   : > { %v1629_v34 = vadd.f32 %v1628_v50, %v1627_v12 }
 0x1b0   : > { %v1630_v63 = vrot.slane %v1629_v34, 2 }
 0x1b1   : > { %v1955_v54 = vpop.eup %1954 }
 0x1b2   : > { %v1957_v0 = vpop.eup %1956  ;;  %v1581_v43 = vxor.u32 2147483648, %v1955_v54  ;;  %v1631_v30 = vadd.f32 %v1630_v63, %v1629_v34 }
 0x1b3   : > { %v1578_v24 = vxor.u32 2147483648, %v1957_v0  ;;  %v1959_v10 = vpop.eup %1958 }
 0x1b4   : > { %v1582_v35 = vsel %vm1580_vm4, %v1581_v43, %v1957_v0  ;;  %v1610_v17 = vmul.f32 %v1959_v10, %v1586_v48  ;;  %v1961_v53 = vpop.eup %1960  ;;  %v1632_v19 = vrot.slane %v1631_v30, 1 }
 0x1b5   : > { %v1579_v44 = vsel %vm1577_vm5, %v1955_v54, %v1578_v24 }
 0x1b6   : > { %v1583_v58 = vsel %vm1576_vm6, %v1579_v44, %v1582_v35  ;;  %v1624_v38 = vmul.f32 %v1616_v15, %v1610_v17  ;;  %v1633_v8 = vadd.f32 %v1632_v19, %v1631_v30 }
 0x1b7   : > { %v1584_v33 = vsel %vm1573_vm7, nan, %v1583_v58 }
 0x1b8   : > { %v1588_v47 = vsub.f32 0.0, %v1584_v33  ;;  %v1651_v11 = vadd.f32 %v1650_v9, %v1633_v8 }
 0x1ba   : > { %v1612_v23 = vmul.f32 %v1961_v53, %v1588_v47 }
 0x1bc   : > { %v1626_v2 = vmul.f32 %v1621_v59, %v1612_v23 }
 0x1be   : > { %v1634_v29 = vadd.f32 %v1626_v2, %v1624_v38 }
 0x1c0   : > { %v1635_v21 = vrot.slane %v1634_v29, 4 }
 0x1c2   : > { %v1636_v13 = vadd.f32 %v1635_v21, %v1634_v29 }
 0x1c4   : > { %v1637_v56 = vrot.slane %v1636_v13, 2 }
 0x1c6   : > { %v1638_v22 = vadd.f32 %v1637_v56, %v1636_v13 }
 0x1c8   : > { %v1639_v49 = vrot.slane %v1638_v22, 1 }
 0x1ca   : > { %v1640_v18 = vadd.f32 %v1639_v49, %v1638_v22 }
 0x1cc   : > { %v1652_v4 = vadd.f32 %v1650_v9, %v1640_v18 }
 0x1ce   : > { %v1655_v31 = vcombine.low %v1651_v11, %v1652_v4 }
 0x1d0   : > { %v1662_v52 = vrot.slane %v1655_v31, %v1661_v57 }
 0x1d2   : > { %v1669_v1 = vrot.slane %v1662_v52, %v1661_v57 }
 0x1d4   : > { %1675 = vst.msk [vmem:[%s272_s30] sm:$0x3] %vm1673_vm8, %v1669_v1 }
 0x1d5   : > { %1975 = shalt.err (!%p1972_p3)
}
 0x1d6   : > { %s1976_s20 = scalar_lea.hbm %s1689_s15, 32  ;;  %s1980_s23 = scalar_lea.hbm %s3094_s7, 64 }
 0x1d7   : > { %p1977_p4 = scmp.ne.s32.totalorder %s1689_s15, %s1976_s20  ;;  %p1981_p9 = scmp.lt.s32.totalorder %s1689_s15, %s3094_s7 }
 0x1d8   : > { %p1982_p10 = scmp.lt.s32.totalorder %s1980_s23, %s1976_s20 }
 0x1d9   : > { %p1978_p7 = pnand %p1977_p4, %p2129_p5 }
 0x1da   : > { %p1983_p11 = por %p1982_p10, %p1981_p9 }
 0x1db   : > { %p1979_p8 = pneg %p1978_p7 }
 0x1dd   : > { %p1984_p12 = pnand %p1983_p11, %p1979_p8 }
 0x1df   : > { %1987 = shalt.err (!%p1984_p12)
}
 0x1e0   : > { %1823 = dma.vmem_to_hbm [thread:$0]  (%p2129_p5), %s1692_s9, 32, %s1689_s15, %s1677_s16  }
 0x1e1 PF: > { %p1829_p13 = scmp.ge.s32.totalorder %s2022_s29, 2  ;;  %s1703_s30 = sand.u32 1, %s2010_s26  }
 0x1e2   : > { %s1704_s10 = scalar_lea.sflag [#allocation4], %s1703_s30 }
 0x1e3   : > { %p1826_p0 = pnand %p1829_p13, %p2133_p6 }
 0x1e5   : > { %p1827_p1 = pneg %p1826_p0 }
 0x1e7   : > { %2005 = dma.done.wait (%p1827_p1), %s1704_s10, 32  }
 0x1e8   : > { %2007 = vsyncadd (%p1827_p1), %s1704_s10, 4294967264  ;;  %p19_p2 = scmp.ge.s32.totalorder %s2116_s8, 4   ;;  %s3145_s26 = smov %s2014_s27 }
 0x1e9   : > { %s3146_s27 = smov %s2018_s28  ;;  %s3147_s28 = smov %s2127_s11 }
 0x1ea   : > { %s3148_s29 = smov %s2116_s8  ;;  %21 = sbr.rel (!%p19_p2) target bundleno = 6 (0x6), region = 83 }
 0x1ef   :  { %1709 = vsyncpa [#allocation4], 1 }
 0x1f0   :  { %1711 = vsyncpa [#allocation4 + $0x1], 1 }

</bundles_post_ra>
